<compile_context>
chip_gen: v7x
topology: tpu7x:2x2x1
jax: 0.10.0
libtpu: 0.0.40
codegen_flags: <defaults>
</compile_context>

<pallas_src>
import math
import numpy as np
import jax
import jax.numpy as jnp
from jax.experimental import pallas as pl
from jax.experimental.pallas import tpu as pltpu

ALPHA = 0.1               # CELU alpha
HIDDEN = (64, 32, 16)
OUT_CH = 1
NUM_ELEMENTS = 4          # ['H', 'C', 'N', 'O']
OUT_PAD = 128             # lane-dense per-atom output width (heads padded to 128)
TM_TARGET = 1024          # atom-row tile (fits comfortably in VMEM on v5e/v6e/v7x)

# ---- ANI AEV constants (match ANINNP.__init__ defaults) ----
RCR, RCA = 5.2, 3.5
ETAR, ETAA, ZETA = 16.0, 8.0, 32.0
SHFR = np.linspace(0.9, RCR - (RCR - 0.9) / 16, 16).astype(np.float32)
SHFA = np.linspace(0.9, RCA - (RCA - 0.9) / 4, 4).astype(np.float32)
SHFZ = np.linspace(np.pi / 16, np.pi - np.pi / 16, 8).astype(np.float32)


def _round_up(x, m):
    return ((x + m - 1) // m) * m


# ----------------------------------------------------------------------------
# Pallas kernel: fused multi-head 4-layer MLP over a tile of atom rows
# ----------------------------------------------------------------------------
def _celu(x):
    # f32 VPU/EUP math on every chip generation
    return jnp.maximum(x, 0.0) + jnp.minimum(0.0, ALPHA * (jnp.exp(x / ALPHA) - 1.0))


def _fused_mlp_kernel(x_ref, w1_ref, b1_ref, w2_ref, b2_ref, w3_ref, b3_ref,
                      w4_ref, b4_ref, out_ref):
    # x: (TM, Dp) bf16 atom rows; weights bf16, biases f32; f32 accumulation.
    h = jnp.dot(x_ref[...], w1_ref[...],
                preferred_element_type=jnp.float32) + b1_ref[...]
    h = _celu(h)
    h = jnp.dot(h.astype(jnp.bfloat16), w2_ref[...],
                preferred_element_type=jnp.float32) + b2_ref[...]
    h = _celu(h)
    h = jnp.dot(h.astype(jnp.bfloat16), w3_ref[...],
                preferred_element_type=jnp.float32) + b3_ref[...]
    h = _celu(h)
    y = jnp.dot(h.astype(jnp.bfloat16), w4_ref[...],
                preferred_element_type=jnp.float32) + b4_ref[...]
    out_ref[...] = y                       # (TM, OUT_PAD) lane-dense f32 store


def _run_fused_mlp(x, layers, n_heads):
    """x: (M, D) f32; layers: fused [(W1,b1)..(W4,b4)]; returns (M, n_heads) f32."""
    M, D = x.shape
    Dp = _round_up(D, 128)
    TM = min(TM_TARGET, _round_up(M, 8))
    Mp = _round_up(M, TM)
    (w1, b1), (w2, b2), (w3, b3), (w4, b4) = layers
    H1, H2, H3 = w2.shape[0], w3.shape[0], w4.shape[0]

    # bf16 inputs/weights (halves HBM/VMEM traffic, doubles MXU rate), f32 acc.
    xp = jnp.zeros((Mp, Dp), jnp.bfloat16).at[:M, :D].set(x.astype(jnp.bfloat16))
    w1p = jnp.zeros((Dp, H1), jnp.bfloat16).at[:D].set(w1.astype(jnp.bfloat16))
    w4p = jnp.zeros((H3, OUT_PAD), jnp.bfloat16).at[:, :n_heads].set(
        w4.astype(jnp.bfloat16))
    b4p = jnp.zeros((1, OUT_PAD), jnp.float32).at[:, :n_heads].set(b4)

    out = pl.pallas_call(
        _fused_mlp_kernel,
        out_shape=jax.ShapeDtypeStruct((Mp, OUT_PAD), jnp.float32),
        grid=(Mp // TM,),
        in_specs=[
            pl.BlockSpec((TM, Dp), lambda i: (i, 0)),        # atom-row tiles
            pl.BlockSpec((Dp, H1), lambda i: (0, 0)),        # weights pinned
            pl.BlockSpec((1, H1), lambda i: (0, 0)),
            pl.BlockSpec((H1, H2), lambda i: (0, 0)),
            pl.BlockSpec((1, H2), lambda i: (0, 0)),
            pl.BlockSpec((H2, H3), lambda i: (0, 0)),
            pl.BlockSpec((1, H3), lambda i: (0, 0)),
            pl.BlockSpec((H3, OUT_PAD), lambda i: (0, 0)),
            pl.BlockSpec((1, OUT_PAD), lambda i: (0, 0)),
        ],
        out_specs=pl.BlockSpec((TM, OUT_PAD), lambda i: (i, 0)),
        compiler_params=pltpu.CompilerParams(
            dimension_semantics=("parallel",),
            vmem_limit_bytes=48 * 1024 * 1024),
    )(xp, w1p, b1,
      w2.astype(jnp.bfloat16), b2,
      w3.astype(jnp.bfloat16), b3,
      w4p, b4p)
    return out[:M, :n_heads]


# ----------------------------------------------------------------------------
# Head fusion: concat layer-1 along output features, block-diag layers 2-4.
# Per-head approx channels become block-structured extra rows of fused W1,
# matching extra columns appended to x (one column per approx-bearing head).
# ----------------------------------------------------------------------------
def _block_diag(mats):
    rows = sum(m.shape[0] for m in mats)
    cols = sum(m.shape[1] for m in mats)
    out = jnp.zeros((rows, cols), jnp.float32)
    r = c = 0
    for m in mats:
        out = out.at[r:r + m.shape[0], c:c + m.shape[1]].set(m)
        r += m.shape[0]
        c += m.shape[1]
    return out


def _fuse_heads(head_params, has_approx, d_aev):
    n = len(head_params)
    h1 = HIDDEN[0]
    n_app = sum(has_approx)
    w1_aev, b1s, w2s, b2s, w3s, b3s, w4s, b4s = [], [], [], [], [], [], [], []
    w1_app = jnp.zeros((n_app, n * h1), jnp.float32)
    col = 0
    for h, (p, ha) in enumerate(zip(head_params, has_approx)):
        (w1, b1), (w2, b2), (w3, b3), (w4, b4) = p
        w1_aev.append(w1[:d_aev])
        if ha:  # the single approx row of this head's W1
            w1_app = w1_app.at[col, h * h1:(h + 1) * h1].set(w1[d_aev])
            col += 1
        b1s.append(b1); w2s.append(w2); b2s.append(b2)
        w3s.append(w3); b3s.append(b3); w4s.append(w4); b4s.append(b4)
    W1 = jnp.concatenate([jnp.concatenate(w1_aev, axis=1), w1_app], axis=0)
    return [(W1, jnp.concatenate(b1s, axis=1)),
            (_block_diag(w2s), jnp.concatenate(b2s, axis=1)),
            (_block_diag(w3s), jnp.concatenate(b3s, axis=1)),
            (_block_diag(w4s), jnp.concatenate(b4s, axis=1))]


# ----------------------------------------------------------------------------
# ANI AEV featurization (plain JAX, jit-fused with the Pallas calls)
# ----------------------------------------------------------------------------
def _pair_index_matrix(S):
    m = np.zeros((S, S), np.int32)
    c = 0
    for a in range(S):
        for b in range(a, S):
            m[a, b] = c
            m[b, a] = c
            c += 1
    return m


def compute_aev(species, coords, S):
    # species: (N, A) int32 in [0, S);  coords: (N, A, 3) f32
    N, A = species.shape
    shfr, shfa, shfz = jnp.asarray(SHFR), jnp.asarray(SHFA), jnp.asarray(SHFZ)

    vec = coords[:, None, :, :] - coords[:, :, None, :]            # (N, i, j, 3)
    d2 = jnp.sum(vec * vec, axis=-1)
    not_self = ~jnp.eye(A, dtype=bool)[None]                       # (1, A, A)
    dist = jnp.sqrt(jnp.where(not_self, d2, 1.0))                  # safe diagonal

    # ---- radial ----
    fcr = jnp.where((dist < RCR) & not_self,
                    0.5 * jnp.cos(np.pi * dist / RCR) + 0.5, 0.0)
    g = 0.25 * jnp.exp(-ETAR * (dist[..., None] - shfr) ** 2) * fcr[..., None]
    oh = jax.nn.one_hot(species, S, dtype=jnp.float32)             # (N, A, S)
    radial = jnp.einsum('nijk,njs->nisk', g, oh).reshape(N, A, S * SHFR.shape[0])

    # ---- angular ----
    within = (dist < RCA) & not_self
    not_same = ~jnp.eye(A, dtype=bool)[None, None]                 # j != k
    pair_mask = within[:, :, :, None] & within[:, :, None, :] & not_same
    dj = dist[:, :, :, None]
    dk = dist[:, :, None, :]
    dotjk = jnp.einsum('nijc,nikc->nijk', vec, vec)
    cos_t = jnp.clip(0.95 * dotjk / (dj * dk), -1.0, 1.0)
    theta = jnp.arccos(cos_t)
    fca = jnp.where(dist < RCA, 0.5 * jnp.cos(np.pi * dist / RCA) + 0.5, 0.0)
    fcjk = fca[:, :, :, None] * fca[:, :, None, :]
    f1 = ((1.0 + jnp.cos(theta[..., None] - shfz)) / 2.0) ** ZETA
    f2 = jnp.exp(-ETAA * ((dj + dk)[..., None] / 2.0 - shfa) ** 2)
    term = 2.0 * f2[..., :, None] * f1[..., None, :]
    term = term * jnp.where(pair_mask, fcjk, 0.0)[..., None, None]
    T = SHFA.shape[0] * SHFZ.shape[0]
    term = term.reshape(N, A, A, A, T)

    P = S * (S + 1) // 2
    pim = jnp.asarray(_pair_index_matrix(S))
    pidx = pim[species[:, :, None], species[:, None, :]]
    pair_oh = jax.nn.one_hot(pidx, P, dtype=jnp.float32)
    angular = 0.5 * jnp.einsum('nijkt,njkp->nipt', term, pair_oh)
    angular = angular.reshape(N, A, P * T)

    return jnp.concatenate([radial, angular], axis=-1)


# ----------------------------------------------------------------------------
# Parameters (xavier_normal weights, zero biases, as in init_params)
# ----------------------------------------------------------------------------
def _xavier_linear(key, d_in, d_out):
    std = math.sqrt(2.0 / (d_in + d_out))
    w = jax.random.normal(key, (d_in, d_out), jnp.float32) * std
    b = jnp.zeros((1, d_out), jnp.float32)
    return w, b


def _make_mlp(key, d_in):
    dims = (d_in,) + HIDDEN + (OUT_CH,)
    ks = jax.random.split(key, len(dims) - 1)
    return [_xavier_linear(k, a, b) for k, a, b in zip(ks, dims[:-1], dims[1:])]


def _aev_dim(num_species):
    radial = num_species * SHFR.shape[0]
    angular = num_species * (num_species + 1) // 2 * SHFA.shape[0] * SHFZ.shape[0]
    return radial + angular


def init_exmod_params(key):
    d_mono = _aev_dim(NUM_ELEMENTS)          # 384  (monomer AEV, no approx)
    d_int0 = _aev_dim(2 * NUM_ELEMENTS)      # 1280 (dimer AEV, no approx)
    d_int1 = d_int0 + 1                      # 1281 (dimer AEV + 1 approx channel)
    names_dims = [('ele_mono', d_mono), ('ele_int', d_int0),
                  ('ect_cat', d_mono), ('ect_an', d_mono), ('ect_int', d_int1),
                  ('vle', d_int1), ('vte', d_int1), ('vth', d_int1)]
    ks = jax.random.split(key, len(names_dims))
    return {name: _make_mlp(k, d) for k, (name, d) in zip(ks, names_dims)}


# ----------------------------------------------------------------------------
# ExmodSeparateNNP forward (return_monomer_terms=False)
# ----------------------------------------------------------------------------
@jax.jit
def _exmod_forward_jit(params, species, coordinates, belongings, approx, idx1, idx2):
    N, A = species.shape
    sp1 = jnp.take(species, idx1, axis=1)
    sp2 = jnp.take(species, idx2, axis=1)
    c1 = jnp.take(coordinates, idx1, axis=1)
    c2 = jnp.take(coordinates, idx2, axis=1)
    A1, A2 = sp1.shape[1], sp2.shape[1]

    # dimer AEV species encoding: species + (belongings - 1) * num_species
    sp_dimer = species + (belongings - 1) * NUM_ELEMENTS

    # --- shared AEVs, each computed exactly once ---
    aev_d = compute_aev(sp_dimer, coordinates, 2 * NUM_ELEMENTS)   # (N, A, 1280)
    aev_1 = compute_aev(sp1, c1, NUM_ELEMENTS)                     # (N, A1, 384)
    aev_2 = compute_aev(sp2, c2, NUM_ELEMENTS)                     # (N, A2, 384)

    # --- fused dimer heads [ele_int, ect_int, vle, vte, vth] (one Pallas call)
    d_aev = aev_d.shape[-1]
    layers_d = _fuse_heads(
        [params['ele_int'], params['ect_int'], params['vle'],
         params['vte'], params['vth']],
        [False, True, True, True, True], d_aev)
    # approx columns (vct, vle, vte, vth) align with the approx-bearing heads
    x_d = jnp.concatenate([aev_d.reshape(N * A, d_aev),
                           approx.reshape(N * A, approx.shape[-1])], axis=-1)
    per_mol_d = _run_fused_mlp(x_d, layers_d, 5).reshape(N, A, 5).sum(axis=1)

    # --- fused monomer-1 heads [ele_mono, ect_cat] (one Pallas call)
    layers_1 = _fuse_heads([params['ele_mono'], params['ect_cat']],
                           [False, False], aev_1.shape[-1])
    per_mol_1 = _run_fused_mlp(aev_1.reshape(N * A1, -1), layers_1, 2) \
        .reshape(N, A1, 2).sum(axis=1)

    # --- monomer-2 head [ect_an] (one Pallas call)
    layers_2 = _fuse_heads([params['ect_an']], [False], aev_2.shape[-1])
    per_mol_2 = _run_fused_mlp(aev_2.reshape(N * A2, -1), layers_2, 1) \
        .reshape(N, A2, 1).sum(axis=1)

    ele = per_mol_1[:, 0] + per_mol_d[:, 0]
    ect = per_mol_1[:, 1] + per_mol_2[:, 0] + per_mol_d[:, 1]
    vle = per_mol_d[:, 2]
    vte = per_mol_d[:, 3]
    vth = per_mol_d[:, 4]
    # torch.stack([...], dim=-1).squeeze()
    return jnp.squeeze(jnp.stack([ele, ect, vle, vte, vth], axis=-1))


def exmod_forward(params, species, coordinates, belongings, approx):
    # Molecule membership is structural (identical across the batch, like the
    # torch masked_select+view); derive static gather indices once on host.
    bel0 = np.asarray(belongings[0])
    idx1 = jnp.asarray(np.flatnonzero(bel0 == 1).astype(np.int32))
    idx2 = jnp.asarray(np.flatnonzero(bel0 == 2).astype(np.int32))
    return _exmod_forward_jit(params, species, coordinates, belongings, approx,
                              idx1, idx2)


# ----------------------------------------------------------------------------
if __name__ == "__main__":
    key = jax.random.PRNGKey(0)
    k_sp, k_co, k_ap, k_par = jax.random.split(key, 4)

    N, A = 2, 8   # 2 dimers, 8 atoms each (4 in molecule 1, 4 in molecule 2)
    species = jax.random.randint(k_sp, (N, A), 0, NUM_ELEMENTS, dtype=jnp.int32)
    coordinates = jax.random.uniform(k_co, (N, A, 3), jnp.float32, 0.0, 3.0)
    belongings = jnp.asarray(np.array([[1, 1, 1, 1, 2, 2, 2, 2]] * N, np.int32))
    approx = jax.random.normal(k_ap, (N, A, 4), jnp.float32)

    params = init_exmod_params(k_par)
    out = exmod_forward(params, species, coordinates, belongings, approx)
    out = jax.block_until_ready(out)
    assert out.shape == (N, 5), out.shape
    assert bool(jnp.all(jnp.isfinite(out)))
    print("KERNEL_OK")
</pallas_src>

<mosaic_0001>
module attributes {stable_mosaic.version = 11 : i64} {
  func.func @_fused_mlp_kernel(%arg0: i32, %arg1: memref<16x1408xbf16, #tpu.memory_space<vmem>>, %arg2: memref<1408x320xbf16, #tpu.memory_space<vmem>>, %arg3: memref<1x320xf32, #tpu.memory_space<vmem>>, %arg4: memref<320x160xbf16, #tpu.memory_space<vmem>>, %arg5: memref<1x160xf32, #tpu.memory_space<vmem>>, %arg6: memref<160x80xbf16, #tpu.memory_space<vmem>>, %arg7: memref<1x80xf32, #tpu.memory_space<vmem>>, %arg8: memref<80x128xbf16, #tpu.memory_space<vmem>>, %arg9: memref<1x128xf32, #tpu.memory_space<vmem>>, %arg10: memref<16x128xf32, #tpu.memory_space<vmem>>) attributes {dimension_semantics = [#tpu.dimension_semantics<parallel>], iteration_bounds = array<i64: 1>, scalar_prefetch = 0 : i64, scratch_operands = 0 : i64, tpu.core_type = #tpu.core_type<tc>, window_params = [{transform_indices = @transform_0, window_bounds = array<i64: 16, 1408>}, {pipeline_mode = #tpu.pipeline_mode<synchronous>, transform_indices = @transform_1, window_bounds = array<i64: 1408, 320>}, {pipeline_mode = #tpu.pipeline_mode<synchronous>, transform_indices = @transform_2, window_bounds = array<i64: 1, 320>}, {pipeline_mode = #tpu.pipeline_mode<synchronous>, transform_indices = @transform_3, window_bounds = array<i64: 320, 160>}, {pipeline_mode = #tpu.pipeline_mode<synchronous>, transform_indices = @transform_4, window_bounds = array<i64: 1, 160>}, {pipeline_mode = #tpu.pipeline_mode<synchronous>, transform_indices = @transform_5, window_bounds = array<i64: 160, 80>}, {pipeline_mode = #tpu.pipeline_mode<synchronous>, transform_indices = @transform_6, window_bounds = array<i64: 1, 80>}, {pipeline_mode = #tpu.pipeline_mode<synchronous>, transform_indices = @transform_7, window_bounds = array<i64: 80, 128>}, {pipeline_mode = #tpu.pipeline_mode<synchronous>, transform_indices = @transform_8, window_bounds = array<i64: 1, 128>}, {transform_indices = @transform_9, window_bounds = array<i64: 16, 128>}]} {
    %c0 = arith.constant 0 : index
    %c0_0 = arith.constant 0 : index
    %0 = vector.load %arg1[%c0, %c0_0] : memref<16x1408xbf16, #tpu.memory_space<vmem>>, vector<16x1408xbf16>
    %c0_1 = arith.constant 0 : index
    %c0_2 = arith.constant 0 : index
    %1 = vector.load %arg2[%c0_1, %c0_2] : memref<1408x320xbf16, #tpu.memory_space<vmem>>, vector<1408x320xbf16>
    %cst = arith.constant dense<0.000000e+00> : vector<16x320xf32>
    %2 = tpu.matmul %0, %1, %cst {dimension_numbers = #tpu.dot_dimension_numbers<[1], [0], [0], [1], [0, 0, 1, 1], [], []>} : vector<16x1408xbf16>, vector<1408x320xbf16>, vector<16x320xf32> -> vector<16x320xf32>
    %c0_3 = arith.constant 0 : index
    %c0_4 = arith.constant 0 : index
    %3 = vector.load %arg3[%c0_3, %c0_4] : memref<1x320xf32, #tpu.memory_space<vmem>>, vector<1x320xf32>
    %4 = vector.broadcast %3 : vector<1x320xf32> to vector<16x320xf32>
    %5 = arith.addf %2, %4 : vector<16x320xf32>
    %cst_5 = arith.constant 0.000000e+00 : f32
    %6 = vector.broadcast %cst_5 : f32 to vector<16x320xf32>
    %7 = arith.maximumf %5, %6 : vector<16x320xf32>
    %cst_6 = arith.constant 1.000000e-01 : f32
    %8 = vector.broadcast %cst_6 : f32 to vector<16x320xf32>
    %9 = arith.divf %5, %8 : vector<16x320xf32>
    %10 = math.exp %9 : vector<16x320xf32>
    %cst_7 = arith.constant 1.000000e+00 : f32
    %11 = vector.broadcast %cst_7 : f32 to vector<16x320xf32>
    %12 = arith.subf %10, %11 : vector<16x320xf32>
    %cst_8 = arith.constant 1.000000e-01 : f32
    %13 = vector.broadcast %cst_8 : f32 to vector<16x320xf32>
    %14 = arith.mulf %13, %12 : vector<16x320xf32>
    %cst_9 = arith.constant 0.000000e+00 : f32
    %15 = vector.broadcast %cst_9 : f32 to vector<16x320xf32>
    %16 = arith.minimumf %15, %14 : vector<16x320xf32>
    %17 = arith.addf %7, %16 : vector<16x320xf32>
    %18 = arith.truncf %17 : vector<16x320xf32> to vector<16x320xbf16>
    %c0_10 = arith.constant 0 : index
    %c0_11 = arith.constant 0 : index
    %19 = vector.load %arg4[%c0_10, %c0_11] : memref<320x160xbf16, #tpu.memory_space<vmem>>, vector<320x160xbf16>
    %cst_12 = arith.constant dense<0.000000e+00> : vector<16x160xf32>
    %20 = tpu.matmul %18, %19, %cst_12 {dimension_numbers = #tpu.dot_dimension_numbers<[1], [0], [0], [1], [0, 0, 1, 1], [], []>} : vector<16x320xbf16>, vector<320x160xbf16>, vector<16x160xf32> -> vector<16x160xf32>
    %c0_13 = arith.constant 0 : index
    %c0_14 = arith.constant 0 : index
    %21 = vector.load %arg5[%c0_13, %c0_14] : memref<1x160xf32, #tpu.memory_space<vmem>>, vector<1x160xf32>
    %22 = vector.broadcast %21 : vector<1x160xf32> to vector<16x160xf32>
    %23 = arith.addf %20, %22 : vector<16x160xf32>
    %cst_15 = arith.constant 0.000000e+00 : f32
    %24 = vector.broadcast %cst_15 : f32 to vector<16x160xf32>
    %25 = arith.maximumf %23, %24 : vector<16x160xf32>
    %cst_16 = arith.constant 1.000000e-01 : f32
    %26 = vector.broadcast %cst_16 : f32 to vector<16x160xf32>
    %27 = arith.divf %23, %26 : vector<16x160xf32>
    %28 = math.exp %27 : vector<16x160xf32>
    %cst_17 = arith.constant 1.000000e+00 : f32
    %29 = vector.broadcast %cst_17 : f32 to vector<16x160xf32>
    %30 = arith.subf %28, %29 : vector<16x160xf32>
    %cst_18 = arith.constant 1.000000e-01 : f32
    %31 = vector.broadcast %cst_18 : f32 to vector<16x160xf32>
    %32 = arith.mulf %31, %30 : vector<16x160xf32>
    %cst_19 = arith.constant 0.000000e+00 : f32
    %33 = vector.broadcast %cst_19 : f32 to vector<16x160xf32>
    %34 = arith.minimumf %33, %32 : vector<16x160xf32>
    %35 = arith.addf %25, %34 : vector<16x160xf32>
    %36 = arith.truncf %35 : vector<16x160xf32> to vector<16x160xbf16>
    %c0_20 = arith.constant 0 : index
    %c0_21 = arith.constant 0 : index
    %37 = vector.load %arg6[%c0_20, %c0_21] : memref<160x80xbf16, #tpu.memory_space<vmem>>, vector<160x80xbf16>
    %cst_22 = arith.constant dense<0.000000e+00> : vector<16x80xf32>
    %38 = tpu.matmul %36, %37, %cst_22 {dimension_numbers = #tpu.dot_dimension_numbers<[1], [0], [0], [1], [0, 0, 1, 1], [], []>} : vector<16x160xbf16>, vector<160x80xbf16>, vector<16x80xf32> -> vector<16x80xf32>
    %c0_23 = arith.constant 0 : index
    %c0_24 = arith.constant 0 : index
    %39 = vector.load %arg7[%c0_23, %c0_24] : memref<1x80xf32, #tpu.memory_space<vmem>>, vector<1x80xf32>
    %40 = vector.broadcast %39 : vector<1x80xf32> to vector<16x80xf32>
    %41 = arith.addf %38, %40 : vector<16x80xf32>
    %cst_25 = arith.constant 0.000000e+00 : f32
    %42 = vector.broadcast %cst_25 : f32 to vector<16x80xf32>
    %43 = arith.maximumf %41, %42 : vector<16x80xf32>
    %cst_26 = arith.constant 1.000000e-01 : f32
    %44 = vector.broadcast %cst_26 : f32 to vector<16x80xf32>
    %45 = arith.divf %41, %44 : vector<16x80xf32>
    %46 = math.exp %45 : vector<16x80xf32>
    %cst_27 = arith.constant 1.000000e+00 : f32
    %47 = vector.broadcast %cst_27 : f32 to vector<16x80xf32>
    %48 = arith.subf %46, %47 : vector<16x80xf32>
    %cst_28 = arith.constant 1.000000e-01 : f32
    %49 = vector.broadcast %cst_28 : f32 to vector<16x80xf32>
    %50 = arith.mulf %49, %48 : vector<16x80xf32>
    %cst_29 = arith.constant 0.000000e+00 : f32
    %51 = vector.broadcast %cst_29 : f32 to vector<16x80xf32>
    %52 = arith.minimumf %51, %50 : vector<16x80xf32>
    %53 = arith.addf %43, %52 : vector<16x80xf32>
    %54 = arith.truncf %53 : vector<16x80xf32> to vector<16x80xbf16>
    %c0_30 = arith.constant 0 : index
    %c0_31 = arith.constant 0 : index
    %55 = vector.load %arg8[%c0_30, %c0_31] : memref<80x128xbf16, #tpu.memory_space<vmem>>, vector<80x128xbf16>
    %cst_32 = arith.constant dense<0.000000e+00> : vector<16x128xf32>
    %56 = tpu.matmul %54, %55, %cst_32 {dimension_numbers = #tpu.dot_dimension_numbers<[1], [0], [0], [1], [0, 0, 1, 1], [], []>} : vector<16x80xbf16>, vector<80x128xbf16>, vector<16x128xf32> -> vector<16x128xf32>
    %c0_33 = arith.constant 0 : index
    %c0_34 = arith.constant 0 : index
    %57 = vector.load %arg9[%c0_33, %c0_34] : memref<1x128xf32, #tpu.memory_space<vmem>>, vector<1x128xf32>
    %58 = vector.broadcast %57 : vector<1x128xf32> to vector<16x128xf32>
    %59 = arith.addf %56, %58 : vector<16x128xf32>
    %c0_35 = arith.constant 0 : index
    %c0_36 = arith.constant 0 : index
    %60 = vector.load %arg10[%c0_35, %c0_36] : memref<16x128xf32, #tpu.memory_space<vmem>>, vector<16x128xf32>
    tpu.vector_store %arg10[%c0_35, %c0_36], %59 {strides = array<i32>} : memref<16x128xf32, #tpu.memory_space<vmem>>, vector<16x128xf32>,
    return
  }
  func.func @transform_0(%arg0: i32) -> (i32, i32) {
    %c0_i32 = arith.constant 0 : i32
    %c0_i32_0 = arith.constant 0 : i32
    return %arg0, %c0_i32 : i32, i32
  }
  func.func @transform_1(%arg0: i32) -> (i32, i32) {
    %c0_i32 = arith.constant 0 : i32
    %c0_i32_0 = arith.constant 0 : i32
    %c0_i32_1 = arith.constant 0 : i32
    return %c0_i32, %c0_i32_0 : i32, i32
  }
  func.func @transform_2(%arg0: i32) -> (i32, i32) {
    %c0_i32 = arith.constant 0 : i32
    %c0_i32_0 = arith.constant 0 : i32
    %c0_i32_1 = arith.constant 0 : i32
    return %c0_i32, %c0_i32_0 : i32, i32
  }
  func.func @transform_3(%arg0: i32) -> (i32, i32) {
    %c0_i32 = arith.constant 0 : i32
    %c0_i32_0 = arith.constant 0 : i32
    %c0_i32_1 = arith.constant 0 : i32
    return %c0_i32, %c0_i32_0 : i32, i32
  }
  func.func @transform_4(%arg0: i32) -> (i32, i32) {
    %c0_i32 = arith.constant 0 : i32
    %c0_i32_0 = arith.constant 0 : i32
    %c0_i32_1 = arith.constant 0 : i32
    return %c0_i32, %c0_i32_0 : i32, i32
  }
  func.func @transform_5(%arg0: i32) -> (i32, i32) {
    %c0_i32 = arith.constant 0 : i32
    %c0_i32_0 = arith.constant 0 : i32
    %c0_i32_1 = arith.constant 0 : i32
    return %c0_i32, %c0_i32_0 : i32, i32
  }
  func.func @transform_6(%arg0: i32) -> (i32, i32) {
    %c0_i32 = arith.constant 0 : i32
    %c0_i32_0 = arith.constant 0 : i32
    %c0_i32_1 = arith.constant 0 : i32
    return %c0_i32, %c0_i32_0 : i32, i32
  }
  func.func @transform_7(%arg0: i32) -> (i32, i32) {
    %c0_i32 = arith.constant 0 : i32
    %c0_i32_0 = arith.constant 0 : i32
    %c0_i32_1 = arith.constant 0 : i32
    return %c0_i32, %c0_i32_0 : i32, i32
  }
  func.func @transform_8(%arg0: i32) -> (i32, i32) {
    %c0_i32 = arith.constant 0 : i32
    %c0_i32_0 = arith.constant 0 : i32
    %c0_i32_1 = arith.constant 0 : i32
    return %c0_i32, %c0_i32_0 : i32, i32
  }
  func.func @transform_9(%arg0: i32) -> (i32, i32) {
    %c0_i32 = arith.constant 0 : i32
    %c0_i32_0 = arith.constant 0 : i32
    return %arg0, %c0_i32 : i32, i32
  }
}

module attributes {stable_mosaic.version = 11 : i64} {
  func.func @_fused_mlp_kernel(%arg0: i32, %arg1: memref<8x384xbf16, #tpu.memory_space<vmem>>, %arg2: memref<384x128xbf16, #tpu.memory_space<vmem>>, %arg3: memref<1x128xf32, #tpu.memory_space<vmem>>, %arg4: memref<128x64xbf16, #tpu.memory_space<vmem>>, %arg5: memref<1x64xf32, #tpu.memory_space<vmem>>, %arg6: memref<64x32xbf16, #tpu.memory_space<vmem>>, %arg7: memref<1x32xf32, #tpu.memory_space<vmem>>, %arg8: memref<32x128xbf16, #tpu.memory_space<vmem>>, %arg9: memref<1x128xf32, #tpu.memory_space<vmem>>, %arg10: memref<8x128xf32, #tpu.memory_space<vmem>>) attributes {dimension_semantics = [#tpu.dimension_semantics<parallel>], iteration_bounds = array<i64: 1>, scalar_prefetch = 0 : i64, scratch_operands = 0 : i64, tpu.core_type = #tpu.core_type<tc>, window_params = [{transform_indices = @transform_0, window_bounds = array<i64: 8, 384>}, {pipeline_mode = #tpu.pipeline_mode<synchronous>, transform_indices = @transform_1, window_bounds = array<i64: 384, 128>}, {pipeline_mode = #tpu.pipeline_mode<synchronous>, transform_indices = @transform_2, window_bounds = array<i64: 1, 128>}, {pipeline_mode = #tpu.pipeline_mode<synchronous>, transform_indices = @transform_3, window_bounds = array<i64: 128, 64>}, {pipeline_mode = #tpu.pipeline_mode<synchronous>, transform_indices = @transform_4, window_bounds = array<i64: 1, 64>}, {pipeline_mode = #tpu.pipeline_mode<synchronous>, transform_indices = @transform_5, window_bounds = array<i64: 64, 32>}, {pipeline_mode = #tpu.pipeline_mode<synchronous>, transform_indices = @transform_6, window_bounds = array<i64: 1, 32>}, {pipeline_mode = #tpu.pipeline_mode<synchronous>, transform_indices = @transform_7, window_bounds = array<i64: 32, 128>}, {pipeline_mode = #tpu.pipeline_mode<synchronous>, transform_indices = @transform_8, window_bounds = array<i64: 1, 128>}, {transform_indices = @transform_9, window_bounds = array<i64: 8, 128>}]} {
    %c0 = arith.constant 0 : index
    %c0_0 = arith.constant 0 : index
    %0 = vector.load %arg1[%c0, %c0_0] : memref<8x384xbf16, #tpu.memory_space<vmem>>, vector<8x384xbf16>
    %c0_1 = arith.constant 0 : index
    %c0_2 = arith.constant 0 : index
    %1 = vector.load %arg2[%c0_1, %c0_2] : memref<384x128xbf16, #tpu.memory_space<vmem>>, vector<384x128xbf16>
    %cst = arith.constant dense<0.000000e+00> : vector<8x128xf32>
    %2 = tpu.matmul %0, %1, %cst {dimension_numbers = #tpu.dot_dimension_numbers<[1], [0], [0], [1], [0, 0, 1, 1], [], []>} : vector<8x384xbf16>, vector<384x128xbf16>, vector<8x128xf32> -> vector<8x128xf32>
    %c0_3 = arith.constant 0 : index
    %c0_4 = arith.constant 0 : index
    %3 = vector.load %arg3[%c0_3, %c0_4] : memref<1x128xf32, #tpu.memory_space<vmem>>, vector<1x128xf32>
    %4 = vector.broadcast %3 : vector<1x128xf32> to vector<8x128xf32>
    %5 = arith.addf %2, %4 : vector<8x128xf32>
    %cst_5 = arith.constant 0.000000e+00 : f32
    %6 = vector.broadcast %cst_5 : f32 to vector<8x128xf32>
    %7 = arith.maximumf %5, %6 : vector<8x128xf32>
    %cst_6 = arith.constant 1.000000e-01 : f32
    %8 = vector.broadcast %cst_6 : f32 to vector<8x128xf32>
    %9 = arith.divf %5, %8 : vector<8x128xf32>
    %10 = math.exp %9 : vector<8x128xf32>
    %cst_7 = arith.constant 1.000000e+00 : f32
    %11 = vector.broadcast %cst_7 : f32 to vector<8x128xf32>
    %12 = arith.subf %10, %11 : vector<8x128xf32>
    %cst_8 = arith.constant 1.000000e-01 : f32
    %13 = vector.broadcast %cst_8 : f32 to vector<8x128xf32>
    %14 = arith.mulf %13, %12 : vector<8x128xf32>
    %cst_9 = arith.constant 0.000000e+00 : f32
    %15 = vector.broadcast %cst_9 : f32 to vector<8x128xf32>
    %16 = arith.minimumf %15, %14 : vector<8x128xf32>
    %17 = arith.addf %7, %16 : vector<8x128xf32>
    %18 = arith.truncf %17 : vector<8x128xf32> to vector<8x128xbf16>
    %c0_10 = arith.constant 0 : index
    %c0_11 = arith.constant 0 : index
    %19 = vector.load %arg4[%c0_10, %c0_11] : memref<128x64xbf16, #tpu.memory_space<vmem>>, vector<128x64xbf16>
    %cst_12 = arith.constant dense<0.000000e+00> : vector<8x64xf32>
    %20 = tpu.matmul %18, %19, %cst_12 {dimension_numbers = #tpu.dot_dimension_numbers<[1], [0], [0], [1], [0, 0, 1, 1], [], []>} : vector<8x128xbf16>, vector<128x64xbf16>, vector<8x64xf32> -> vector<8x64xf32>
    %c0_13 = arith.constant 0 : index
    %c0_14 = arith.constant 0 : index
    %21 = vector.load %arg5[%c0_13, %c0_14] : memref<1x64xf32, #tpu.memory_space<vmem>>, vector<1x64xf32>
    %22 = vector.broadcast %21 : vector<1x64xf32> to vector<8x64xf32>
    %23 = arith.addf %20, %22 : vector<8x64xf32>
    %cst_15 = arith.constant 0.000000e+00 : f32
    %24 = vector.broadcast %cst_15 : f32 to vector<8x64xf32>
    %25 = arith.maximumf %23, %24 : vector<8x64xf32>
    %cst_16 = arith.constant 1.000000e-01 : f32
    %26 = vector.broadcast %cst_16 : f32 to vector<8x64xf32>
    %27 = arith.divf %23, %26 : vector<8x64xf32>
    %28 = math.exp %27 : vector<8x64xf32>
    %cst_17 = arith.constant 1.000000e+00 : f32
    %29 = vector.broadcast %cst_17 : f32 to vector<8x64xf32>
    %30 = arith.subf %28, %29 : vector<8x64xf32>
    %cst_18 = arith.constant 1.000000e-01 : f32
    %31 = vector.broadcast %cst_18 : f32 to vector<8x64xf32>
    %32 = arith.mulf %31, %30 : vector<8x64xf32>
    %cst_19 = arith.constant 0.000000e+00 : f32
    %33 = vector.broadcast %cst_19 : f32 to vector<8x64xf32>
    %34 = arith.minimumf %33, %32 : vector<8x64xf32>
    %35 = arith.addf %25, %34 : vector<8x64xf32>
    %36 = arith.truncf %35 : vector<8x64xf32> to vector<8x64xbf16>
    %c0_20 = arith.constant 0 : index
    %c0_21 = arith.constant 0 : index
    %37 = vector.load %arg6[%c0_20, %c0_21] : memref<64x32xbf16, #tpu.memory_space<vmem>>, vector<64x32xbf16>
    %cst_22 = arith.constant dense<0.000000e+00> : vector<8x32xf32>
    %38 = tpu.matmul %36, %37, %cst_22 {dimension_numbers = #tpu.dot_dimension_numbers<[1], [0], [0], [1], [0, 0, 1, 1], [], []>} : vector<8x64xbf16>, vector<64x32xbf16>, vector<8x32xf32> -> vector<8x32xf32>
    %c0_23 = arith.constant 0 : index
    %c0_24 = arith.constant 0 : index
    %39 = vector.load %arg7[%c0_23, %c0_24] : memref<1x32xf32, #tpu.memory_space<vmem>>, vector<1x32xf32>
    %40 = vector.broadcast %39 : vector<1x32xf32> to vector<8x32xf32>
    %41 = arith.addf %38, %40 : vector<8x32xf32>
    %cst_25 = arith.constant 0.000000e+00 : f32
    %42 = vector.broadcast %cst_25 : f32 to vector<8x32xf32>
    %43 = arith.maximumf %41, %42 : vector<8x32xf32>
    %cst_26 = arith.constant 1.000000e-01 : f32
    %44 = vector.broadcast %cst_26 : f32 to vector<8x32xf32>
    %45 = arith.divf %41, %44 : vector<8x32xf32>
    %46 = math.exp %45 : vector<8x32xf32>
    %cst_27 = arith.constant 1.000000e+00 : f32
    %47 = vector.broadcast %cst_27 : f32 to vector<8x32xf32>
    %48 = arith.subf %46, %47 : vector<8x32xf32>
    %cst_28 = arith.constant 1.000000e-01 : f32
    %49 = vector.broadcast %cst_28 : f32 to vector<8x32xf32>
    %50 = arith.mulf %49, %48 : vector<8x32xf32>
    %cst_29 = arith.constant 0.000000e+00 : f32
    %51 = vector.broadcast %cst_29 : f32 to vector<8x32xf32>
    %52 = arith.minimumf %51, %50 : vector<8x32xf32>
    %53 = arith.addf %43, %52 : vector<8x32xf32>
    %54 = arith.truncf %53 : vector<8x32xf32> to vector<8x32xbf16>
    %c0_30 = arith.constant 0 : index
    %c0_31 = arith.constant 0 : index
    %55 = vector.load %arg8[%c0_30, %c0_31] : memref<32x128xbf16, #tpu.memory_space<vmem>>, vector<32x128xbf16>
    %cst_32 = arith.constant dense<0.000000e+00> : vector<8x128xf32>
    %56 = tpu.matmul %54, %55, %cst_32 {dimension_numbers = #tpu.dot_dimension_numbers<[1], [0], [0], [1], [0, 0, 1, 1], [], []>} : vector<8x32xbf16>, vector<32x128xbf16>, vector<8x128xf32> -> vector<8x128xf32>
    %c0_33 = arith.constant 0 : index
    %c0_34 = arith.constant 0 : index
    %57 = vector.load %arg9[%c0_33, %c0_34] : memref<1x128xf32, #tpu.memory_space<vmem>>, vector<1x128xf32>
    %58 = vector.broadcast %57 : vector<1x128xf32> to vector<8x128xf32>
    %59 = arith.addf %56, %58 : vector<8x128xf32>
    %c0_35 = arith.constant 0 : index
    %c0_36 = arith.constant 0 : index
    %60 = vector.load %arg10[%c0_35, %c0_36] : memref<8x128xf32, #tpu.memory_space<vmem>>, vector<8x128xf32>
    tpu.vector_store %arg10[%c0_35, %c0_36], %59 {strides = array<i32>} : memref<8x128xf32, #tpu.memory_space<vmem>>, vector<8x128xf32>,
    return
  }
  func.func @transform_0(%arg0: i32) -> (i32, i32) {
    %c0_i32 = arith.constant 0 : i32
    %c0_i32_0 = arith.constant 0 : i32
    return %arg0, %c0_i32 : i32, i32
  }
  func.func @transform_1(%arg0: i32) -> (i32, i32) {
    %c0_i32 = arith.constant 0 : i32
    %c0_i32_0 = arith.constant 0 : i32
    %c0_i32_1 = arith.constant 0 : i32
    return %c0_i32, %c0_i32_0 : i32, i32
  }
  func.func @transform_2(%arg0: i32) -> (i32, i32) {
    %c0_i32 = arith.constant 0 : i32
    %c0_i32_0 = arith.constant 0 : i32
    %c0_i32_1 = arith.constant 0 : i32
    return %c0_i32, %c0_i32_0 : i32, i32
  }
  func.func @transform_3(%arg0: i32) -> (i32, i32) {
    %c0_i32 = arith.constant 0 : i32
    %c0_i32_0 = arith.constant 0 : i32
    %c0_i32_1 = arith.constant 0 : i32
    return %c0_i32, %c0_i32_0 : i32, i32
  }
  func.func @transform_4(%arg0: i32) -> (i32, i32) {
    %c0_i32 = arith.constant 0 : i32
    %c0_i32_0 = arith.constant 0 : i32
    %c0_i32_1 = arith.constant 0 : i32
    return %c0_i32, %c0_i32_0 : i32, i32
  }
  func.func @transform_5(%arg0: i32) -> (i32, i32) {
    %c0_i32 = arith.constant 0 : i32
    %c0_i32_0 = arith.constant 0 : i32
    %c0_i32_1 = arith.constant 0 : i32
    return %c0_i32, %c0_i32_0 : i32, i32
  }
  func.func @transform_6(%arg0: i32) -> (i32, i32) {
    %c0_i32 = arith.constant 0 : i32
    %c0_i32_0 = arith.constant 0 : i32
    %c0_i32_1 = arith.constant 0 : i32
    return %c0_i32, %c0_i32_0 : i32, i32
  }
  func.func @transform_7(%arg0: i32) -> (i32, i32) {
    %c0_i32 = arith.constant 0 : i32
    %c0_i32_0 = arith.constant 0 : i32
    %c0_i32_1 = arith.constant 0 : i32
    return %c0_i32, %c0_i32_0 : i32, i32
  }
  func.func @transform_8(%arg0: i32) -> (i32, i32) {
    %c0_i32 = arith.constant 0 : i32
    %c0_i32_0 = arith.constant 0 : i32
    %c0_i32_1 = arith.constant 0 : i32
    return %c0_i32, %c0_i32_0 : i32, i32
  }
  func.func @transform_9(%arg0: i32) -> (i32, i32) {
    %c0_i32 = arith.constant 0 : i32
    %c0_i32_0 = arith.constant 0 : i32
    return %arg0, %c0_i32 : i32, i32
  }
}

module attributes {stable_mosaic.version = 11 : i64} {
  func.func @_fused_mlp_kernel(%arg0: i32, %arg1: memref<8x384xbf16, #tpu.memory_space<vmem>>, %arg2: memref<384x64xbf16, #tpu.memory_space<vmem>>, %arg3: memref<1x64xf32, #tpu.memory_space<vmem>>, %arg4: memref<64x32xbf16, #tpu.memory_space<vmem>>, %arg5: memref<1x32xf32, #tpu.memory_space<vmem>>, %arg6: memref<32x16xbf16, #tpu.memory_space<vmem>>, %arg7: memref<1x16xf32, #tpu.memory_space<vmem>>, %arg8: memref<16x128xbf16, #tpu.memory_space<vmem>>, %arg9: memref<1x128xf32, #tpu.memory_space<vmem>>, %arg10: memref<8x128xf32, #tpu.memory_space<vmem>>) attributes {dimension_semantics = [#tpu.dimension_semantics<parallel>], iteration_bounds = array<i64: 1>, scalar_prefetch = 0 : i64, scratch_operands = 0 : i64, tpu.core_type = #tpu.core_type<tc>, window_params = [{transform_indices = @transform_0, window_bounds = array<i64: 8, 384>}, {pipeline_mode = #tpu.pipeline_mode<synchronous>, transform_indices = @transform_1, window_bounds = array<i64: 384, 64>}, {pipeline_mode = #tpu.pipeline_mode<synchronous>, transform_indices = @transform_2, window_bounds = array<i64: 1, 64>}, {pipeline_mode = #tpu.pipeline_mode<synchronous>, transform_indices = @transform_3, window_bounds = array<i64: 64, 32>}, {pipeline_mode = #tpu.pipeline_mode<synchronous>, transform_indices = @transform_4, window_bounds = array<i64: 1, 32>}, {pipeline_mode = #tpu.pipeline_mode<synchronous>, transform_indices = @transform_5, window_bounds = array<i64: 32, 16>}, {pipeline_mode = #tpu.pipeline_mode<synchronous>, transform_indices = @transform_6, window_bounds = array<i64: 1, 16>}, {pipeline_mode = #tpu.pipeline_mode<synchronous>, transform_indices = @transform_7, window_bounds = array<i64: 16, 128>}, {pipeline_mode = #tpu.pipeline_mode<synchronous>, transform_indices = @transform_8, window_bounds = array<i64: 1, 128>}, {transform_indices = @transform_9, window_bounds = array<i64: 8, 128>}]} {
    %c0 = arith.constant 0 : index
    %c0_0 = arith.constant 0 : index
    %0 = vector.load %arg1[%c0, %c0_0] : memref<8x384xbf16, #tpu.memory_space<vmem>>, vector<8x384xbf16>
    %c0_1 = arith.constant 0 : index
    %c0_2 = arith.constant 0 : index
    %1 = vector.load %arg2[%c0_1, %c0_2] : memref<384x64xbf16, #tpu.memory_space<vmem>>, vector<384x64xbf16>
    %cst = arith.constant dense<0.000000e+00> : vector<8x64xf32>
    %2 = tpu.matmul %0, %1, %cst {dimension_numbers = #tpu.dot_dimension_numbers<[1], [0], [0], [1], [0, 0, 1, 1], [], []>} : vector<8x384xbf16>, vector<384x64xbf16>, vector<8x64xf32> -> vector<8x64xf32>
    %c0_3 = arith.constant 0 : index
    %c0_4 = arith.constant 0 : index
    %3 = vector.load %arg3[%c0_3, %c0_4] : memref<1x64xf32, #tpu.memory_space<vmem>>, vector<1x64xf32>
    %4 = vector.broadcast %3 : vector<1x64xf32> to vector<8x64xf32>
    %5 = arith.addf %2, %4 : vector<8x64xf32>
    %cst_5 = arith.constant 0.000000e+00 : f32
    %6 = vector.broadcast %cst_5 : f32 to vector<8x64xf32>
    %7 = arith.maximumf %5, %6 : vector<8x64xf32>
    %cst_6 = arith.constant 1.000000e-01 : f32
    %8 = vector.broadcast %cst_6 : f32 to vector<8x64xf32>
    %9 = arith.divf %5, %8 : vector<8x64xf32>
    %10 = math.exp %9 : vector<8x64xf32>
    %cst_7 = arith.constant 1.000000e+00 : f32
    %11 = vector.broadcast %cst_7 : f32 to vector<8x64xf32>
    %12 = arith.subf %10, %11 : vector<8x64xf32>
    %cst_8 = arith.constant 1.000000e-01 : f32
    %13 = vector.broadcast %cst_8 : f32 to vector<8x64xf32>
    %14 = arith.mulf %13, %12 : vector<8x64xf32>
    %cst_9 = arith.constant 0.000000e+00 : f32
    %15 = vector.broadcast %cst_9 : f32 to vector<8x64xf32>
    %16 = arith.minimumf %15, %14 : vector<8x64xf32>
    %17 = arith.addf %7, %16 : vector<8x64xf32>
    %18 = arith.truncf %17 : vector<8x64xf32> to vector<8x64xbf16>
    %c0_10 = arith.constant 0 : index
    %c0_11 = arith.constant 0 : index
    %19 = vector.load %arg4[%c0_10, %c0_11] : memref<64x32xbf16, #tpu.memory_space<vmem>>, vector<64x32xbf16>
    %cst_12 = arith.constant dense<0.000000e+00> : vector<8x32xf32>
    %20 = tpu.matmul %18, %19, %cst_12 {dimension_numbers = #tpu.dot_dimension_numbers<[1], [0], [0], [1], [0, 0, 1, 1], [], []>} : vector<8x64xbf16>, vector<64x32xbf16>, vector<8x32xf32> -> vector<8x32xf32>
    %c0_13 = arith.constant 0 : index
    %c0_14 = arith.constant 0 : index
    %21 = vector.load %arg5[%c0_13, %c0_14] : memref<1x32xf32, #tpu.memory_space<vmem>>, vector<1x32xf32>
    %22 = vector.broadcast %21 : vector<1x32xf32> to vector<8x32xf32>
    %23 = arith.addf %20, %22 : vector<8x32xf32>
    %cst_15 = arith.constant 0.000000e+00 : f32
    %24 = vector.broadcast %cst_15 : f32 to vector<8x32xf32>
    %25 = arith.maximumf %23, %24 : vector<8x32xf32>
    %cst_16 = arith.constant 1.000000e-01 : f32
    %26 = vector.broadcast %cst_16 : f32 to vector<8x32xf32>
    %27 = arith.divf %23, %26 : vector<8x32xf32>
    %28 = math.exp %27 : vector<8x32xf32>
    %cst_17 = arith.constant 1.000000e+00 : f32
    %29 = vector.broadcast %cst_17 : f32 to vector<8x32xf32>
    %30 = arith.subf %28, %29 : vector<8x32xf32>
    %cst_18 = arith.constant 1.000000e-01 : f32
    %31 = vector.broadcast %cst_18 : f32 to vector<8x32xf32>
    %32 = arith.mulf %31, %30 : vector<8x32xf32>
    %cst_19 = arith.constant 0.000000e+00 : f32
    %33 = vector.broadcast %cst_19 : f32 to vector<8x32xf32>
    %34 = arith.minimumf %33, %32 : vector<8x32xf32>
    %35 = arith.addf %25, %34 : vector<8x32xf32>
    %36 = arith.truncf %35 : vector<8x32xf32> to vector<8x32xbf16>
    %c0_20 = arith.constant 0 : index
    %c0_21 = arith.constant 0 : index
    %37 = vector.load %arg6[%c0_20, %c0_21] : memref<32x16xbf16, #tpu.memory_space<vmem>>, vector<32x16xbf16>
    %cst_22 = arith.constant dense<0.000000e+00> : vector<8x16xf32>
    %38 = tpu.matmul %36, %37, %cst_22 {dimension_numbers = #tpu.dot_dimension_numbers<[1], [0], [0], [1], [0, 0, 1, 1], [], []>} : vector<8x32xbf16>, vector<32x16xbf16>, vector<8x16xf32> -> vector<8x16xf32>
    %c0_23 = arith.constant 0 : index
    %c0_24 = arith.constant 0 : index
    %39 = vector.load %arg7[%c0_23, %c0_24] : memref<1x16xf32, #tpu.memory_space<vmem>>, vector<1x16xf32>
    %40 = vector.broadcast %39 : vector<1x16xf32> to vector<8x16xf32>
    %41 = arith.addf %38, %40 : vector<8x16xf32>
    %cst_25 = arith.constant 0.000000e+00 : f32
    %42 = vector.broadcast %cst_25 : f32 to vector<8x16xf32>
    %43 = arith.maximumf %41, %42 : vector<8x16xf32>
    %cst_26 = arith.constant 1.000000e-01 : f32
    %44 = vector.broadcast %cst_26 : f32 to vector<8x16xf32>
    %45 = arith.divf %41, %44 : vector<8x16xf32>
    %46 = math.exp %45 : vector<8x16xf32>
    %cst_27 = arith.constant 1.000000e+00 : f32
    %47 = vector.broadcast %cst_27 : f32 to vector<8x16xf32>
    %48 = arith.subf %46, %47 : vector<8x16xf32>
    %cst_28 = arith.constant 1.000000e-01 : f32
    %49 = vector.broadcast %cst_28 : f32 to vector<8x16xf32>
    %50 = arith.mulf %49, %48 : vector<8x16xf32>
    %cst_29 = arith.constant 0.000000e+00 : f32
    %51 = vector.broadcast %cst_29 : f32 to vector<8x16xf32>
    %52 = arith.minimumf %51, %50 : vector<8x16xf32>
    %53 = arith.addf %43, %52 : vector<8x16xf32>
    %54 = arith.truncf %53 : vector<8x16xf32> to vector<8x16xbf16>
    %c0_30 = arith.constant 0 : index
    %c0_31 = arith.constant 0 : index
    %55 = vector.load %arg8[%c0_30, %c0_31] : memref<16x128xbf16, #tpu.memory_space<vmem>>, vector<16x128xbf16>
    %cst_32 = arith.constant dense<0.000000e+00> : vector<8x128xf32>
    %56 = tpu.matmul %54, %55, %cst_32 {dimension_numbers = #tpu.dot_dimension_numbers<[1], [0], [0], [1], [0, 0, 1, 1], [], []>} : vector<8x16xbf16>, vector<16x128xbf16>, vector<8x128xf32> -> vector<8x128xf32>
    %c0_33 = arith.constant 0 : index
    %c0_34 = arith.constant 0 : index
    %57 = vector.load %arg9[%c0_33, %c0_34] : memref<1x128xf32, #tpu.memory_space<vmem>>, vector<1x128xf32>
    %58 = vector.broadcast %57 : vector<1x128xf32> to vector<8x128xf32>
    %59 = arith.addf %56, %58 : vector<8x128xf32>
    %c0_35 = arith.constant 0 : index
    %c0_36 = arith.constant 0 : index
    %60 = vector.load %arg10[%c0_35, %c0_36] : memref<8x128xf32, #tpu.memory_space<vmem>>, vector<8x128xf32>
    tpu.vector_store %arg10[%c0_35, %c0_36], %59 {strides = array<i32>} : memref<8x128xf32, #tpu.memory_space<vmem>>, vector<8x128xf32>,
    return
  }
  func.func @transform_0(%arg0: i32) -> (i32, i32) {
    %c0_i32 = arith.constant 0 : i32
    %c0_i32_0 = arith.constant 0 : i32
    return %arg0, %c0_i32 : i32, i32
  }
  func.func @transform_1(%arg0: i32) -> (i32, i32) {
    %c0_i32 = arith.constant 0 : i32
    %c0_i32_0 = arith.constant 0 : i32
    %c0_i32_1 = arith.constant 0 : i32
    return %c0_i32, %c0_i32_0 : i32, i32
  }
  func.func @transform_2(%arg0: i32) -> (i32, i32) {
    %c0_i32 = arith.constant 0 : i32
    %c0_i32_0 = arith.constant 0 : i32
    %c0_i32_1 = arith.constant 0 : i32
    return %c0_i32, %c0_i32_0 : i32, i32
  }
  func.func @transform_3(%arg0: i32) -> (i32, i32) {
    %c0_i32 = arith.constant 0 : i32
    %c0_i32_0 = arith.constant 0 : i32
    %c0_i32_1 = arith.constant 0 : i32
    return %c0_i32, %c0_i32_0 : i32, i32
  }
  func.func @transform_4(%arg0: i32) -> (i32, i32) {
    %c0_i32 = arith.constant 0 : i32
    %c0_i32_0 = arith.constant 0 : i32
    %c0_i32_1 = arith.constant 0 : i32
    return %c0_i32, %c0_i32_0 : i32, i32
  }
  func.func @transform_5(%arg0: i32) -> (i32, i32) {
    %c0_i32 = arith.constant 0 : i32
    %c0_i32_0 = arith.constant 0 : i32
    %c0_i32_1 = arith.constant 0 : i32
    return %c0_i32, %c0_i32_0 : i32, i32
  }
  func.func @transform_6(%arg0: i32) -> (i32, i32) {
    %c0_i32 = arith.constant 0 : i32
    %c0_i32_0 = arith.constant 0 : i32
    %c0_i32_1 = arith.constant 0 : i32
    return %c0_i32, %c0_i32_0 : i32, i32
  }
  func.func @transform_7(%arg0: i32) -> (i32, i32) {
    %c0_i32 = arith.constant 0 : i32
    %c0_i32_0 = arith.constant 0 : i32
    %c0_i32_1 = arith.constant 0 : i32
    return %c0_i32, %c0_i32_0 : i32, i32
  }
  func.func @transform_8(%arg0: i32) -> (i32, i32) {
    %c0_i32 = arith.constant 0 : i32
    %c0_i32_0 = arith.constant 0 : i32
    %c0_i32_1 = arith.constant 0 : i32
    return %c0_i32, %c0_i32_0 : i32, i32
  }
  func.func @transform_9(%arg0: i32) -> (i32, i32) {
    %c0_i32 = arith.constant 0 : i32
    %c0_i32_0 = arith.constant 0 : i32
    return %arg0, %c0_i32 : i32, i32
  }
}

</mosaic_0001>

<bundles_post_ra>
// kernel: _exmod_forward_jit.3
= control target key start
LH: loop header
LB: loop body
LE: loop exit
PB: predicated region body
PF: predicated region fallthrough
CT: control target
= control target key end

     0   :  { %vm4066_vm0 = vmmov 0   ;;  %vm2686_vm1 = vcmask 523264   ;;  %vm2897_vm2 = vcmask 261120   ;;  %vm3006_vm3 = vcmask 654336   ;;  %s5224_s1 = inlined_call_operand.vmem [shape: bf16[1408,320], index: 1, kind: input, shape index: {}]   ;;  %s5225_s0 = inlined_call_operand.vmem [shape: bf16[16,1408], index: 0, kind: input, shape index: {}]   ;;  %s5226_s2 = inlined_call_operand.vmem [shape: f32[1,320], index: 2, kind: input, shape index: {}]   ;;  %s5227_s3 = inlined_call_operand.vmem [shape: bf16[320,160], index: 3, kind: input, shape index: {}]   ;;  %s5228_s5 = inlined_call_operand.vmem [shape: bf16[160,80], index: 5, kind: input, shape index: {}]   ;;  %s5229_s4 = inlined_call_operand.vmem [shape: f32[1,160], index: 4, kind: input, shape index: {}]   ;;  %s5230_s7 = inlined_call_operand.vmem [shape: bf16[80,128], index: 7, kind: input, shape index: {}]   ;;  %s5231_s6 = inlined_call_operand.vmem [shape: f32[1,80], index: 6, kind: input, shape index: {}]   ;;  %s5232_s8 = inlined_call_operand.vmem [shape: f32[1,128], index: 8, kind: input, shape index: {}]   ;;  %s5233_s9 = inlined_call_operand.vmem [shape: f32[16,128], index: 9, kind: output, shape index: {}]  }
   0x1   :  { %v3598_v0 = vld [vmem:[%s5224_s1 + $0x4] ss:$12 sps:$4 sm:$0xff]   ;;  %v3600_v1 = vld [vmem:[%s5224_s1] ss:$12 sps:$4 sm:$0xff]   ;;  %v3601_v2 = vld [vmem:[%s5224_s1 + $0x1c] ss:$12 sps:$4 sm:$0xff]  }
   0x2   :  { %1878 = vmatprep.subr.bf16.mxu0 %v3598_v0  ;;  %v3603_v3 = vld [vmem:[%s5224_s1 + $0x18] ss:$12 sps:$4 sm:$0xff]   ;;  %v3604_v4 = vld [vmem:[%s5224_s1 + $0x34] ss:$12 sps:$4 sm:$0xff]   ;;  %v3606_v7 = vld [vmem:[%s5224_s1 + $0x30] ss:$12 sps:$4 sm:$0xff]  }
   0x3   :  { %1879 = vmatpush1.bf16.msra.mxu0 %v3600_v1  ;;  %v3607_v5 = vld [vmem:[%s5224_s1 + $0xc8] ss:$12 sps:$4 sm:$0xff]   ;;  %v3609_v8 = vld [vmem:[%s5224_s1 + $0x4c] ss:$12 sps:$4 sm:$0xff]   ;;  %v3614_v12 = vld [vmem:[%s5224_s1 + $0x64] ss:$12 sps:$4 sm:$0xff]  }
   0x4   :  { %1880 = vmatprep.subr.bf16.mxu0 %v3601_v2  ;;  %v3608_v6 = vld [vmem:[%s5224_s1 + $0x8] ss:$12 sps:$4 sm:$0xff]   ;;  %3404 = vmatprep.subr.bf16.mxu1 %v3607_v5  ;;  %v3612_v9 = vld [vmem:[%s5224_s1 + $0xe0] ss:$12 sps:$4 sm:$0xff]   ;;  %v3617_v13 = vld [vmem:[%s5224_s1 + $0xf8] ss:$12 sps:$4 sm:$0xff]  }
   0x5   :  { %3405 = vmatpush3.bf16.msra.mxu1 %v3608_v6  ;;  %v3613_v10 = vld [vmem:[%s5224_s1 + $0x20] ss:$12 sps:$4 sm:$0xff]   ;;  %v3611_v11 = vld [vmem:[%s5224_s1 + $0x48] ss:$12 sps:$4 sm:$0xff]   ;;  %v3618_v14 = vld [vmem:[%s5224_s1 + $0x38] ss:$12 sps:$4 sm:$0xff]  }
   0x6   :  { %3406 = vmatprep.subr.bf16.mxu1 %v3612_v9  ;;  %v3616_v15 = vld [vmem:[%s5224_s1 + $0x60] ss:$12 sps:$4 sm:$0xff]   ;;  %v3622_v16 = vld [vmem:[%s5224_s1 + $0x110] ss:$12 sps:$4 sm:$0xff]   ;;  %v3621_v19 = vld [vmem:[%s5224_s1 + $0x78] ss:$12 sps:$4 sm:$0xff]  }
   0x7   :  { %1881 = vmatpush1.bf16.msra.mxu0 %v3603_v3  ;;  %v3623_v17 = vld [vmem:[%s5224_s1 + $0x50] ss:$12 sps:$4 sm:$0xff]   ;;  %v3627_v20 = vld [vmem:[%s5224_s1 + $0x128] ss:$12 sps:$4 sm:$0xff]   ;;  %v3632_v23 = vld [vmem:[%s5224_s1 + $0x140] ss:$12 sps:$4 sm:$0xff]  }
   0x8   :  { %1882 = vmatprep.subr.bf16.mxu0 %v3604_v4  ;;  %v3619_v18 = vld [vmem:[%s5224_s1 + $0x7c] ss:$12 sps:$4 sm:$0xff]   ;;  %v3624_v22 = vld [vmem:[%s5224_s1 + $0x94] ss:$12 sps:$4 sm:$0xff]   ;;  %v3629_v25 = vld [vmem:[%s5224_s1 + $0xac] ss:$12 sps:$4 sm:$0xff]  }
   0x9   :  { %3407 = vmatpush3.bf16.msra.mxu1 %v3613_v10  ;;  %v3628_v21 = vld [vmem:[%s5224_s1 + $0x68] ss:$12 sps:$4 sm:$0xff]   ;;  %v3626_v24 = vld [vmem:[%s5224_s1 + $0x90] ss:$12 sps:$4 sm:$0xff]   ;;  %v3633_v26 = vld [vmem:[%s5224_s1 + $0x80] ss:$12 sps:$4 sm:$0xff]  }
   0xa   :  { %3408 = vmatprep.subr.bf16.mxu1 %v3617_v13  ;;  %v3637_v27 = vld [vmem:[%s5224_s1 + $0x158] ss:$12 sps:$4 sm:$0xff]   ;;  %v3631_v28 = vld [vmem:[%s5224_s1 + $0xa8] ss:$12 sps:$4 sm:$0xff]   ;;  %v3642_v31 = vld [vmem:[%s5224_s1 + $0x170] ss:$12 sps:$4 sm:$0xff]  }
   0xb   :  { %1883 = vmatpush1.bf16.msra.mxu0 %v3606_v7  ;;  %v3634_v29 = vld [vmem:[%s5224_s1 + $0xc4] ss:$12 sps:$4 sm:$0xff]   ;;  %v3636_v32 = vld [vmem:[%s5224_s1 + $0xc0] ss:$12 sps:$4 sm:$0xff]   ;;  %v3639_v33 = vld [vmem:[%s5224_s1 + $0xdc] ss:$12 sps:$4 sm:$0xff]  }
   0xc   :  { %1884 = vmatprep.subr.bf16.mxu0 %v3609_v8  ;;  %v3638_v30 = vld [vmem:[%s5224_s1 + $0x98] ss:$12 sps:$4 sm:$0xff]   ;;  %v3643_v34 = vld [vmem:[%s5224_s1 + $0xb0] ss:$12 sps:$4 sm:$0xff]   ;;  %v3650_v36 = vld [vmem:[%s5224_s1 + $0x248] ss:$12 sps:$4 sm:$0xff]  }
   0xd   :  { %3409 = vmatpush3.bf16.msra.mxu1 %v3618_v14  ;;  %v3649_v35 = vld [vmem:[%s5225_s0 + $0x4] ss:$44 sps:$4 sm:$0xff]   ;;  %v3644_v38 = vld [vmem:[%s5224_s1 + $0xf4] ss:$12 sps:$4 sm:$0xff]   ;;  %v3652_v43 = vld [vmem:[%s5224_s1 + $0x10c] ss:$12 sps:$4 sm:$0xff]  }
   0xe   :  { %3410 = vmatprep.subr.bf16.mxu1 %v3622_v16  ;;  %v3641_v37 = vld [vmem:[%s5224_s1 + $0xd8] ss:$12 sps:$4 sm:$0xff]   ;;  %2168 = vmatprep.mubr.bf16.mxu1 %v3649_v35  ;;  %v4238_v39 = vld [vmem:[%s5225_s0] ss:$44 sps:$4 sm:$0xff]   ;;  %v3651_v40 = vld [vmem:[%s5224_s1 + $0x188] ss:$12 sps:$4 sm:$0xff]  }
   0xf   :  { %1885 = vmatpush1.bf16.msra.mxu0 %v3611_v11  ;;  %1910 = vmatprep.mubr.bf16.mxu0 %v3649_v35  ;;  %v3655_v41 = vld [vmem:[%s5224_s1 + $0x260] ss:$12 sps:$4 sm:$0xff]   ;;  %v3646_v42 = vld [vmem:[%s5224_s1 + $0xf0] ss:$12 sps:$4 sm:$0xff]   ;;  %v3660_v45 = vld [vmem:[%s5224_s1 + $0x278] ss:$12 sps:$4 sm:$0xff]  }
  0x10   :  { %1886 = vmatprep.subr.bf16.mxu0 %v3614_v12  ;;  %v3656_v44 = vld [vmem:[%s5224_s1 + $0x1a0] ss:$12 sps:$4 sm:$0xff]   ;;  %v3654_v46 = vld [vmem:[%s5224_s1 + $0x108] ss:$12 sps:$4 sm:$0xff]   ;;  %v3657_v47 = vld [vmem:[%s5224_s1 + $0x124] ss:$12 sps:$4 sm:$0xff]  }
  0x11   :  { %3411 = vmatpush3.bf16.msra.mxu1 %v3623_v17  ;;  %v3661_v48 = vld [vmem:[%s5224_s1 + $0x1b8] ss:$12 sps:$4 sm:$0xff]   ;;  %v3665_v49 = vld [vmem:[%s5224_s1 + $0x290] ss:$12 sps:$4 sm:$0xff]   ;;  %v3659_v50 = vld [vmem:[%s5224_s1 + $0x120] ss:$12 sps:$4 sm:$0xff]  }
  0x12   :  { %3412 = vmatprep.subr.bf16.mxu1 %v3627_v20  ;;  %v3666_v51 = vld [vmem:[%s5224_s1 + $0x1d0] ss:$12 sps:$4 sm:$0xff]   ;;  %v3670_v53 = vld [vmem:[%s5224_s1 + $0x2a8] ss:$12 sps:$4 sm:$0xff]   ;;  %v3664_v54 = vld [vmem:[%s5224_s1 + $0x138] ss:$12 sps:$4 sm:$0xff]  }
  0x13   :  { %1887 = vmatpush1.bf16.msra.mxu0 %v3616_v15  ;;  %v3662_v52 = vld [vmem:[%s5224_s1 + $0x13c] ss:$12 sps:$4 sm:$0xff]   ;;  %v3667_v55 = vld [vmem:[%s5224_s1 + $0x154] ss:$12 sps:$4 sm:$0xff]   ;;  %v3672_v59 = vld [vmem:[%s5224_s1 + $0x16c] ss:$12 sps:$4 sm:$0xff]  }
  0x14   :  { %1888 = vmatprep.subr.bf16.mxu0 %v3619_v18  ;;  %v3671_v56 = vld [vmem:[%s5224_s1 + $0x1e8] ss:$12 sps:$4 sm:$0xff]   ;;  %v3675_v57 = vld [vmem:[%s5224_s1 + $0x2c0] ss:$12 sps:$4 sm:$0xff]   ;;  %v3669_v58 = vld [vmem:[%s5224_s1 + $0x150] ss:$12 sps:$4 sm:$0xff]  }
  0x15   :  { %3413 = vmatpush3.bf16.msra.mxu1 %v3628_v21  ;;  %v3676_v60 = vld [vmem:[%s5224_s1 + $0x200] ss:$12 sps:$4 sm:$0xff]   ;;  %v3680_v61 = vld [vmem:[%s5224_s1 + $0x2d8] ss:$12 sps:$4 sm:$0xff]   ;;  %v3674_v62 = vld [vmem:[%s5224_s1 + $0x168] ss:$12 sps:$4 sm:$0xff]  }
  0x16   :  { %3414 = vmatprep.subr.bf16.mxu1 %v3632_v23  ;;  %v3679_v63 = vld [vmem:[%s5224_s1 + $0x184] ss:$12 sps:$4 sm:$0xff]   ;;  %v3692_v1 = vld [vmem:[%s5225_s0 + $0xc] ss:$44 sps:$4 sm:$0xff]   ;;  %v3684_v4 = vld [vmem:[%s5224_s1 + $0x19c] ss:$12 sps:$4 sm:$0xff]  }
  0x17   :  { %1889 = vmatpush1.bf16.msra.mxu0 %v3621_v19  ;;  %v3681_v0 = vld [vmem:[%s5224_s1 + $0x218] ss:$12 sps:$4 sm:$0xff]   ;;  %v3685_v2 = vld [vmem:[%s5224_s1 + $0x2f0] ss:$12 sps:$4 sm:$0xff]   ;;  %v3677_v3 = vld [vmem:[%s5224_s1 + $0x180] ss:$12 sps:$4 sm:$0xff]  }
  0x18   :  { %1890 = vmatprep.subr.bf16.mxu0 %v3624_v22  ;;  %v3686_v5 = vld [vmem:[%s5224_s1 + $0x230] ss:$12 sps:$4 sm:$0xff]   ;;  %v3693_v6 = vld [vmem:[%s5224_s1 + $0x3c8] ss:$12 sps:$4 sm:$0xff]   ;;  %v3682_v7 = vld [vmem:[%s5224_s1 + $0x198] ss:$12 sps:$4 sm:$0xff]  }
  0x19   :  { %3415 = vmatpush3.bf16.msra.mxu1 %v3633_v26  ;;  %v3689_v8 = vld [vmem:[%s5224_s1 + $0x1b4] ss:$12 sps:$4 sm:$0xff]   ;;  %v3687_v12 = vld [vmem:[%s5224_s1 + $0x1b0] ss:$12 sps:$4 sm:$0xff]   ;;  %v3697_v13 = vld [vmem:[%s5224_s1 + $0x1cc] ss:$12 sps:$4 sm:$0xff]  }
  0x1a   :  { %3416 = vmatprep.subr.bf16.mxu1 %v3637_v27  ;;  %v4344_v9 = vld [vmem:[%s5225_s0 + $0x8] ss:$44 sps:$4 sm:$0xff]   ;;  %v3698_v11 = vld [vmem:[%s5224_s1 + $0x3e0] ss:$12 sps:$4 sm:$0xff]   ;;  %v3703_v15 = vld [vmem:[%s5224_s1 + $0x3f8] ss:$12 sps:$4 sm:$0xff]  }
  0x1b   :  { %1891 = vmatpush1.bf16.msra.mxu0 %v3626_v24  ;;  %v3694_v10 = vld [vmem:[%s5224_s1 + $0x308] ss:$12 sps:$4 sm:$0xff]   ;;  %v3699_v14 = vld [vmem:[%s5224_s1 + $0x320] ss:$12 sps:$4 sm:$0xff]   ;;  %v3704_v17 = vld [vmem:[%s5224_s1 + $0x338] ss:$12 sps:$4 sm:$0xff]  }
  0x1c   :  { %1892 = vmatprep.subr.bf16.mxu0 %v3629_v25  ;;  %v3695_v16 = vld [vmem:[%s5224_s1 + $0x1c8] ss:$12 sps:$4 sm:$0xff]   ;;  %v3702_v18 = vld [vmem:[%s5224_s1 + $0x1e4] ss:$12 sps:$4 sm:$0xff]   ;;  %v3700_v20 = vld [vmem:[%s5224_s1 + $0x1e0] ss:$12 sps:$4 sm:$0xff]  }
  0x1d   :  { %3417 = vmatpush3.bf16.msra.mxu1 %v3638_v30  ;;  %v3708_v19 = vld [vmem:[%s5224_s1 + $0x410] ss:$12 sps:$4 sm:$0xff]   ;;  %v3713_v23 = vld [vmem:[%s5224_s1 + $0x428] ss:$12 sps:$4 sm:$0xff]   ;;  %v3705_v24 = vld [vmem:[%s5224_s1 + $0x1f8] ss:$12 sps:$4 sm:$0xff]  }
  0x1e   :  { %3418 = vmatprep.subr.bf16.mxu1 %v3642_v31  ;;  %v3707_v21 = vld [vmem:[%s5224_s1 + $0x1fc] ss:$12 sps:$4 sm:$0xff]   ;;  %v3712_v25 = vld [vmem:[%s5224_s1 + $0x214] ss:$12 sps:$4 sm:$0xff]   ;;  %v3724_v35 = vld [vmem:[%s5224_s1 + $0x398] ss:$12 sps:$4 sm:$0xff]  }
  0x1f   :  { %1893 = vmatpush1.bf16.msra.mxu0 %v3631_v28  ;;  %v3709_v22 = vld [vmem:[%s5224_s1 + $0x350] ss:$12 sps:$4 sm:$0xff]   ;;  %v3714_v26 = vld [vmem:[%s5224_s1 + $0x368] ss:$12 sps:$4 sm:$0xff]   ;;  %v3718_v27 = vld [vmem:[%s5224_s1 + $0x440] ss:$12 sps:$4 sm:$0xff]  }
  0x20   :  { %1894 = vmatprep.subr.bf16.mxu0 %v3634_v29  ;;  %v3710_v28 = vld [vmem:[%s5224_s1 + $0x210] ss:$12 sps:$4 sm:$0xff]   ;;  %v3717_v29 = vld [vmem:[%s5224_s1 + $0x22c] ss:$12 sps:$4 sm:$0xff]   ;;  %v4413_v31 = vld [vmem:[%s5225_s0 + $0x14] ss:$44 sps:$4 sm:$0xff]  }
  0x21   :  { %3419 = vmatpush3.bf16.msra.mxu1 %v3643_v34  ;;  %v3719_v30 = vld [vmem:[%s5224_s1 + $0x380] ss:$12 sps:$4 sm:$0xff]   ;;  %v3722_v34 = vld [vmem:[%s5224_s1 + $0x244] ss:$12 sps:$4 sm:$0xff]  }
  0x22   :  { %3426 = vmatprep.subr.bf16.mxu1 %v3650_v36  ;;  %v3728_v36 = vld [vmem:[%s5224_s1 + $0x470] ss:$12 sps:$4 sm:$0xff]  }
  0x23   :  { %1895 = vmatpush1.bf16.msra.mxu0 %v3636_v32  ;;  %v3723_v32 = vld [vmem:[%s5224_s1 + $0x458] ss:$12 sps:$4 sm:$0xff]  }
  0x24   :  { %1896 = vmatprep.subr.bf16.mxu0 %v3639_v33  ;;  %2169 = vmatmul.mubr.bf16.vlgmr.msra.gmra.mrb[0].mxu1 %v4238_v39  ;;  %v3715_v33 = vld [vmem:[%s5224_s1 + $0x228] ss:$12 sps:$4 sm:$0xff]  }
  0x25   :  { %3427 = vmatpush3.bf16.msra.mxu1 %v3651_v40  ;;  %2209 = vmatprep.mubr.bf16.mxu1 %v3692_v1  ;;  %v3736_v40 = vld [vmem:[%s5224_s1 + $0x548] ss:$12 sps:$4 sm:$0xff]  }
  0x26   :  { %3428 = vmatprep.subr.bf16.mxu1 %v3655_v41  ;;  %v3725_v41 = vld [vmem:[%s5224_s1 + $0x258] ss:$12 sps:$4 sm:$0xff]  }
  0x27   :  { %1897 = vmatpush1.bf16.msra.mxu0 %v3641_v37  ;;  %v3720_v37 = vld [vmem:[%s5224_s1 + $0x240] ss:$12 sps:$4 sm:$0xff]  }
  0x28   :  { %1898 = vmatprep.subr.bf16.mxu0 %v3644_v38  ;;  %v3727_v38 = vld [vmem:[%s5224_s1 + $0x25c] ss:$12 sps:$4 sm:$0xff]  }
  0x29   :  { %3429 = vmatpush3.bf16.msra.mxu1 %v3656_v44  ;;  %v3737_v44 = vld [vmem:[%s5224_s1 + $0x488] ss:$12 sps:$4 sm:$0xff]  }
  0x2a   :  { %3430 = vmatprep.subr.bf16.mxu1 %v3660_v45  ;;  %v3741_v45 = vld [vmem:[%s5224_s1 + $0x560] ss:$12 sps:$4 sm:$0xff]  }
  0x2b   :  { %1899 = vmatpush1.bf16.msra.mxu0 %v3646_v42  ;;  %v3732_v42 = vld [vmem:[%s5224_s1 + $0x274] ss:$12 sps:$4 sm:$0xff]  }
  0x2c   :  { %1900 = vmatprep.subr.bf16.mxu0 %v3652_v43  ;;  %v4452_v43 = vld [vmem:[%s5225_s0 + $0x10] ss:$44 sps:$4 sm:$0xff]  }
  0x2d   :  { %3431 = vmatpush3.bf16.msra.mxu1 %v3661_v48  ;;  %v3740_v48 = vld [vmem:[%s5224_s1 + $0x28c] ss:$12 sps:$4 sm:$0xff]  }
  0x2e   :  { %3432 = vmatprep.subr.bf16.mxu1 %v3665_v49  ;;  %v3746_v49 = vld [vmem:[%s5224_s1 + $0x578] ss:$12 sps:$4 sm:$0xff]  }
  0x2f   :  { %1901 = vmatpush1.bf16.msra.mxu0 %v3654_v46  ;;  %v3730_v46 = vld [vmem:[%s5224_s1 + $0x270] ss:$12 sps:$4 sm:$0xff]  }
  0x30   :  { %1902 = vmatprep.subr.bf16.mxu0 %v3657_v47  ;;  %v3742_v47 = vld [vmem:[%s5224_s1 + $0x4a0] ss:$12 sps:$4 sm:$0xff]  }
  0x31   :  { %3433 = vmatpush3.bf16.msra.mxu1 %v3666_v51  ;;  %v3745_v51 = vld [vmem:[%s5224_s1 + $0x2a4] ss:$12 sps:$4 sm:$0xff]  }
  0x32   :  { %3434 = vmatprep.subr.bf16.mxu1 %v3670_v53  ;;  %v3751_v53 = vld [vmem:[%s5224_s1 + $0x590] ss:$12 sps:$4 sm:$0xff]  }
  0x33   :  { %1903 = vmatpush1.bf16.msra.mxu0 %v3659_v50  ;;  %v3738_v50 = vld [vmem:[%s5224_s1 + $0x288] ss:$12 sps:$4 sm:$0xff]  }
  0x34   :  { %1904 = vmatprep.subr.bf16.mxu0 %v3662_v52  ;;  %v3747_v52 = vld [vmem:[%s5224_s1 + $0x4b8] ss:$12 sps:$4 sm:$0xff]  }
  0x35   :  { %3435 = vmatpush3.bf16.msra.mxu1 %v3671_v56  ;;  %v3752_v56 = vld [vmem:[%s5224_s1 + $0x4d0] ss:$12 sps:$4 sm:$0xff]  }
  0x36   :  { %3436 = vmatprep.subr.bf16.mxu1 %v3675_v57  ;;  %v3756_v57 = vld [vmem:[%s5224_s1 + $0x5a8] ss:$12 sps:$4 sm:$0xff]  }
  0x37   :  { %1905 = vmatpush1.bf16.msra.mxu0 %v3664_v54  ;;  %v3743_v54 = vld [vmem:[%s5224_s1 + $0x2a0] ss:$12 sps:$4 sm:$0xff]  }
  0x38   :  { %1906 = vmatprep.subr.bf16.mxu0 %v3667_v55  ;;  %v3750_v55 = vld [vmem:[%s5224_s1 + $0x2bc] ss:$12 sps:$4 sm:$0xff]  }
  0x39   :  { %3437 = vmatpush3.bf16.msra.mxu1 %v3676_v60  ;;  %v3757_v60 = vld [vmem:[%s5224_s1 + $0x4e8] ss:$12 sps:$4 sm:$0xff]  }
  0x3a   :  { %3438 = vmatprep.subr.bf16.mxu1 %v3680_v61  ;;  %v4509_v61 = vld [vmem:[%s5225_s0 + $0x1c] ss:$44 sps:$4 sm:$0xff]  }
  0x3b   :  { %1907 = vmatpush1.bf16.msra.mxu0 %v3669_v58  ;;  %v3748_v58 = vld [vmem:[%s5224_s1 + $0x2b8] ss:$12 sps:$4 sm:$0xff]  }
  0x3c   :  { %1908 = vmatprep.subr.bf16.mxu0 %v3672_v59  ;;  %v3755_v59 = vld [vmem:[%s5224_s1 + $0x2d4] ss:$12 sps:$4 sm:$0xff]  }
  0x3d   :  { %3439 = vmatpush3.bf16.msra.mxu1 %v3681_v0  ;;  %v3760_v0 = vld [vmem:[%s5224_s1 + $0x2ec] ss:$12 sps:$4 sm:$0xff]  }
  0x3e   :  { %3440 = vmatprep.subr.bf16.mxu1 %v3685_v2  ;;  %v3766_v2 = vld [vmem:[%s5224_s1 + $0x5d8] ss:$12 sps:$4 sm:$0xff]  }
  0x3f   :  { %1909 = vmatpush1.bf16.msra.mxu0 %v3674_v62  ;;  %v3761_v62 = vld [vmem:[%s5224_s1 + $0x5c0] ss:$12 sps:$4 sm:$0xff]  }
  0x40   :  { %1921 = vmatprep.subr.bf16.mxu0 %v3679_v63  ;;  %v3753_v63 = vld [vmem:[%s5224_s1 + $0x2d0] ss:$12 sps:$4 sm:$0xff]  }
  0x41   :  { %3441 = vmatpush3.bf16.msra.mxu1 %v3686_v5  ;;  %v3767_v5 = vld [vmem:[%s5224_s1 + $0x518] ss:$12 sps:$4 sm:$0xff]  }
  0x42   :  { %1911 = vmatmul.mubr.bf16.vlgmr.msra.gmra.mrb[0].mxu0 %v4238_v39  ;;  %3448 = vmatprep.subr.bf16.mxu1 %v3693_v6  ;;  %v3729_v39 = vld [vmem:[%s5224_s1 + $0x3b0] ss:$12 sps:$4 sm:$0xff]  }
  0x43   :  { %1922 = vmatpush1.bf16.msra.mxu0 %v3677_v3  ;;  %1953 = vmatprep.mubr.bf16.mxu0 %v3692_v1  ;;  %v3762_v1 = vld [vmem:[%s5224_s1 + $0x500] ss:$12 sps:$4 sm:$0xff]   ;;  %v3758_v3 = vld [vmem:[%s5224_s1 + $0x2e8] ss:$12 sps:$4 sm:$0xff]   ;;  %v3771_v6 = vld [vmem:[%s5224_s1 + $0x5f0] ss:$12 sps:$4 sm:$0xff]  }
  0x44   :  { %1923 = vmatprep.subr.bf16.mxu0 %v3684_v4  ;;  %2210 = vmatmul.mubr.bf16.vlgmr.msra.gmra.mrb[4].mxu1 %v4344_v9  ;;  %v3765_v4 = vld [vmem:[%s5224_s1 + $0x304] ss:$12 sps:$4 sm:$0xff]  }
  0x45   :  { %3449 = vmatpush3.bf16.msra.mxu1 %v3694_v10  ;;  %2250 = vmatprep.mubr.bf16.mxu1 %v4413_v31  ;;  %v3772_v10 = vld [vmem:[%s5224_s1 + $0x530] ss:$12 sps:$4 sm:$0xff]  }
  0x46   :  { %3450 = vmatprep.subr.bf16.mxu1 %v3698_v11  ;;  %v3779_v11 = vld [vmem:[%s5224_s1 + $0x6c8] ss:$12 sps:$4 sm:$0xff]  }
  0x47   :  { %1924 = vmatpush1.bf16.msra.mxu0 %v3682_v7  ;;  %v3763_v7 = vld [vmem:[%s5224_s1 + $0x300] ss:$12 sps:$4 sm:$0xff]  }
  0x48   :  { %1925 = vmatprep.subr.bf16.mxu0 %v3689_v8  ;;  %v3770_v8 = vld [vmem:[%s5224_s1 + $0x31c] ss:$12 sps:$4 sm:$0xff]  }
  0x49   :  { %3451 = vmatpush3.bf16.msra.mxu1 %v3699_v14  ;;  %v3780_v14 = vld [vmem:[%s5224_s1 + $0x608] ss:$12 sps:$4 sm:$0xff]  }
  0x4a   :  { %3452 = vmatprep.subr.bf16.mxu1 %v3703_v15  ;;  %v3775_v15 = vld [vmem:[%s5224_s1 + $0x334] ss:$12 sps:$4 sm:$0xff]  }
  0x4b   :  { %1926 = vmatpush1.bf16.msra.mxu0 %v3687_v12  ;;  %v3768_v12 = vld [vmem:[%s5224_s1 + $0x318] ss:$12 sps:$4 sm:$0xff]  }
  0x4c   :  { %1927 = vmatprep.subr.bf16.mxu0 %v3697_v13  ;;  %v4558_v13 = vld [vmem:[%s5225_s0 + $0x18] ss:$44 sps:$4 sm:$0xff]  }
  0x4d   :  { %3453 = vmatpush3.bf16.msra.mxu1 %v3704_v17  ;;  %v3783_v17 = vld [vmem:[%s5224_s1 + $0x34c] ss:$12 sps:$4 sm:$0xff]  }
  0x4e   :  { %3454 = vmatprep.subr.bf16.mxu1 %v3708_v19  ;;  %v3789_v19 = vld [vmem:[%s5224_s1 + $0x6f8] ss:$12 sps:$4 sm:$0xff]  }
  0x4f   :  { %1928 = vmatpush1.bf16.msra.mxu0 %v3695_v16  ;;  %v3773_v16 = vld [vmem:[%s5224_s1 + $0x330] ss:$12 sps:$4 sm:$0xff]  }
  0x50   :  { %1929 = vmatprep.subr.bf16.mxu0 %v3702_v18  ;;  %v3785_v18 = vld [vmem:[%s5224_s1 + $0x620] ss:$12 sps:$4 sm:$0xff]  }
  0x51   :  { %3455 = vmatpush3.bf16.msra.mxu1 %v3709_v22  ;;  %v3790_v22 = vld [vmem:[%s5224_s1 + $0x638] ss:$12 sps:$4 sm:$0xff]  }
  0x52   :  { %3456 = vmatprep.subr.bf16.mxu1 %v3713_v23  ;;  %v3794_v23 = vld [vmem:[%s5224_s1 + $0x710] ss:$12 sps:$4 sm:$0xff]  }
  0x53   :  { %1930 = vmatpush1.bf16.msra.mxu0 %v3700_v20  ;;  %v3781_v20 = vld [vmem:[%s5224_s1 + $0x348] ss:$12 sps:$4 sm:$0xff]  }
  0x54   :  { %1931 = vmatprep.subr.bf16.mxu0 %v3707_v21  ;;  %v3788_v21 = vld [vmem:[%s5224_s1 + $0x364] ss:$12 sps:$4 sm:$0xff]  }
  0x55   :  { %3457 = vmatpush3.bf16.msra.mxu1 %v3714_v26  ;;  %v3795_v26 = vld [vmem:[%s5224_s1 + $0x650] ss:$12 sps:$4 sm:$0xff]  }
  0x56   :  { %3458 = vmatprep.subr.bf16.mxu1 %v3718_v27  ;;  %v4607_v27 = vld [vmem:[%s5225_s0 + $0x24] ss:$44 sps:$4 sm:$0xff]  }
  0x57   :  { %1932 = vmatpush1.bf16.msra.mxu0 %v3705_v24  ;;  %v3786_v24 = vld [vmem:[%s5224_s1 + $0x360] ss:$12 sps:$4 sm:$0xff]  }
  0x58   :  { %1933 = vmatprep.subr.bf16.mxu0 %v3712_v25  ;;  %v3793_v25 = vld [vmem:[%s5224_s1 + $0x37c] ss:$12 sps:$4 sm:$0xff]  }
  0x59   :  { %3459 = vmatpush3.bf16.msra.mxu1 %v3719_v30  ;;  %v3800_v30 = vld [vmem:[%s5224_s1 + $0x668] ss:$12 sps:$4 sm:$0xff]  }
  0x5a   :  { %3460 = vmatprep.subr.bf16.mxu1 %v3723_v32  ;;  %v3804_v32 = vld [vmem:[%s5224_s1 + $0x740] ss:$12 sps:$4 sm:$0xff]  }
  0x5b   :  { %1934 = vmatpush1.bf16.msra.mxu0 %v3710_v28  ;;  %v3799_v28 = vld [vmem:[%s5224_s1 + $0x728] ss:$12 sps:$4 sm:$0xff]  }
  0x5c   :  { %1935 = vmatprep.subr.bf16.mxu0 %v3717_v29  ;;  %v3791_v29 = vld [vmem:[%s5224_s1 + $0x378] ss:$12 sps:$4 sm:$0xff]  }
  0x5d   :  { %3461 = vmatpush3.bf16.msra.mxu1 %v3724_v35  ;;  %v3805_v35 = vld [vmem:[%s5224_s1 + $0x680] ss:$12 sps:$4 sm:$0xff]  }
  0x5e   :  { %3462 = vmatprep.subr.bf16.mxu1 %v3728_v36  ;;  %v3809_v36 = vld [vmem:[%s5224_s1 + $0x758] ss:$12 sps:$4 sm:$0xff]  }
  0x5f   :  { %1936 = vmatpush1.bf16.msra.mxu0 %v3715_v33  ;;  %v3796_v33 = vld [vmem:[%s5224_s1 + $0x390] ss:$12 sps:$4 sm:$0xff]  }
  0x60   :  { %1937 = vmatprep.subr.bf16.mxu0 %v3722_v34  ;;  %v3803_v34 = vld [vmem:[%s5224_s1 + $0x3ac] ss:$12 sps:$4 sm:$0xff]  }
  0x61   :  { %3463 = vmatpush3.bf16.msra.mxu1 %v3729_v39  ;;  %v3810_v39 = vld [vmem:[%s5224_s1 + $0x698] ss:$12 sps:$4 sm:$0xff]  }
  0x62   :  { %3470 = vmatprep.subr.bf16.mxu1 %v3736_v40  ;;  %v3814_v40 = vld [vmem:[%s5224_s1 + $0x770] ss:$12 sps:$4 sm:$0xff]  }
  0x63   :  { %1938 = vmatpush1.bf16.msra.mxu0 %v3720_v37  ;;  %v3801_v37 = vld [vmem:[%s5224_s1 + $0x3a8] ss:$12 sps:$4 sm:$0xff]  }
  0x64   :  { %1939 = vmatprep.subr.bf16.mxu0 %v3727_v38  ;;  %2251 = vmatmul.mubr.bf16.vlgmr.msra.gmra.mrb[8].mxu1 %v4452_v43  ;;  %v3808_v38 = vld [vmem:[%s5224_s1 + $0x3c4] ss:$12 sps:$4 sm:$0xff]  }
  0x65   :  { %3471 = vmatpush3.bf16.msra.mxu1 %v3737_v44  ;;  %2291 = vmatprep.mubr.bf16.mxu1 %v4509_v61  ;;  %v3813_v44 = vld [vmem:[%s5224_s1 + $0x3dc] ss:$12 sps:$4 sm:$0xff]  }
  0x66   :  { %3472 = vmatprep.subr.bf16.mxu1 %v3741_v45  ;;  %v3811_v45 = vld [vmem:[%s5224_s1 + $0x3d8] ss:$12 sps:$4 sm:$0xff]  }
  0x67   :  { %1940 = vmatpush1.bf16.msra.mxu0 %v3725_v41  ;;  %v3806_v41 = vld [vmem:[%s5224_s1 + $0x3c0] ss:$12 sps:$4 sm:$0xff]  }
  0x68   :  { %1941 = vmatprep.subr.bf16.mxu0 %v3732_v42  ;;  %v3815_v42 = vld [vmem:[%s5224_s1 + $0x6b0] ss:$12 sps:$4 sm:$0xff]  }
  0x69   :  { %3473 = vmatpush3.bf16.msra.mxu1 %v3742_v47  ;;  %v3822_v47 = vld [vmem:[%s5224_s1 + $0x788] ss:$12 sps:$4 sm:$0xff]  }
  0x6a   :  { %3474 = vmatprep.subr.bf16.mxu1 %v3746_v49  ;;  %v4065_v49 = vmov 0.0  }
  0x6b   :  { %1942 = vmatpush1.bf16.msra.mxu0 %v3730_v46  ;;  %v4664_v46 = vld [vmem:[%s5225_s0 + $0x20] ss:$44 sps:$4 sm:$0xff]  }
  0x6c   :  { %1943 = vmatprep.subr.bf16.mxu0 %v3740_v48  ;;  %v3818_v48 = vld [vmem:[%s5224_s1 + $0x3f4] ss:$12 sps:$4 sm:$0xff]  }
  0x6d   :  { %3475 = vmatpush3.bf16.msra.mxu1 %v3747_v52  ;;  %v3825_v52 = vld [vmem:[%s5224_s1 + $0x40c] ss:$12 sps:$4 sm:$0xff]  }
  0x6e   :  { %3476 = vmatprep.subr.bf16.mxu1 %v3751_v53  ;;  %v3823_v53 = vld [vmem:[%s5224_s1 + $0x408] ss:$12 sps:$4 sm:$0xff]  }
  0x6f   :  { %1944 = vmatpush1.bf16.msra.mxu0 %v3738_v50  ;;  %v3816_v50 = vld [vmem:[%s5224_s1 + $0x3f0] ss:$12 sps:$4 sm:$0xff]  }
  0x70   :  { %1945 = vmatprep.subr.bf16.mxu0 %v3745_v51  ;;  %v3826_v51 = vld [vmem:[%s5224_s1 + $0x7a0] ss:$12 sps:$4 sm:$0xff]  }
  0x71   :  { %3477 = vmatpush3.bf16.msra.mxu1 %v3752_v56  ;;  %v3827_v56 = vld [vmem:[%s5224_s1 + $0x420] ss:$12 sps:$4 sm:$0xff]  }
  0x72   :  { %3478 = vmatprep.subr.bf16.mxu1 %v3756_v57  ;;  %v3834_v57 = vld [vmem:[%s5224_s1 + $0x7d0] ss:$12 sps:$4 sm:$0xff]  }
  0x73   :  { %1946 = vmatpush1.bf16.msra.mxu0 %v3743_v54  ;;  %v3830_v54 = vld [vmem:[%s5224_s1 + $0x7b8] ss:$12 sps:$4 sm:$0xff]  }
  0x74   :  { %1947 = vmatprep.subr.bf16.mxu0 %v3750_v55  ;;  %v3829_v55 = vld [vmem:[%s5224_s1 + $0x424] ss:$12 sps:$4 sm:$0xff]  }
  0x75   :  { %3479 = vmatpush3.bf16.msra.mxu1 %v3757_v60  ;;  %v3838_v60 = vld [vmem:[%s5224_s1 + $0x7e8] ss:$12 sps:$4 sm:$0xff]  }
  0x76   :  { %3480 = vmatprep.subr.bf16.mxu1 %v3761_v62  ;;  %v3837_v62 = vld [vmem:[%s5224_s1 + $0x454] ss:$12 sps:$4 sm:$0xff]  }
  0x77   :  { %1948 = vmatpush1.bf16.msra.mxu0 %v3748_v58  ;;  %v3833_v58 = vld [vmem:[%s5224_s1 + $0x43c] ss:$12 sps:$4 sm:$0xff]  }
  0x78   :  { %1949 = vmatprep.subr.bf16.mxu0 %v3755_v59  ;;  %v3831_v59 = vld [vmem:[%s5224_s1 + $0x438] ss:$12 sps:$4 sm:$0xff]  }
  0x79   :  { %3481 = vmatpush3.bf16.msra.mxu1 %v3762_v1  ;;  %v3841_v1 = vld [vmem:[%s5224_s1 + $0x46c] ss:$12 sps:$4 sm:$0xff]  }
  0x7a   :  { %3482 = vmatprep.subr.bf16.mxu1 %v3766_v2  ;;  %v3839_v2 = vld [vmem:[%s5224_s1 + $0x468] ss:$12 sps:$4 sm:$0xff]  }
  0x7b   :  { %1950 = vmatpush1.bf16.msra.mxu0 %v3753_v63  ;;  %v3835_v63 = vld [vmem:[%s5224_s1 + $0x450] ss:$12 sps:$4 sm:$0xff]  }
  0x7c   :  { %1951 = vmatprep.subr.bf16.mxu0 %v3760_v0  ;;  %v3842_v0 = vld [vmem:[%s5224_s1 + $0x800] ss:$12 sps:$4 sm:$0xff]  }
  0x7d   :  { %3483 = vmatpush3.bf16.msra.mxu1 %v3767_v5  ;;  %v3843_v5 = vld [vmem:[%s5224_s1 + $0x480] ss:$12 sps:$4 sm:$0xff]  }
  0x7e   :  { %3484 = vmatprep.subr.bf16.mxu1 %v3771_v6  ;;  %v3850_v6 = vld [vmem:[%s5224_s1 + $0x830] ss:$12 sps:$4 sm:$0xff]  }
  0x7f   :  { %1952 = vmatpush1.bf16.msra.mxu0 %v3758_v3  ;;  %v3846_v3 = vld [vmem:[%s5224_s1 + $0x818] ss:$12 sps:$4 sm:$0xff]  }
  0x80   :  { %1964 = vmatprep.subr.bf16.mxu0 %v3765_v4  ;;  %v3845_v4 = vld [vmem:[%s5224_s1 + $0x484] ss:$12 sps:$4 sm:$0xff]  }
  0x81   :  { %3485 = vmatpush3.bf16.msra.mxu1 %v3772_v10  ;;  %v3847_v10 = vld [vmem:[%s5224_s1 + $0x498] ss:$12 sps:$4 sm:$0xff]  }
  0x82   :  { %1954 = vmatmul.mubr.bf16.vlgmr.msra.gmra.mrb[0].mxu0 %v4344_v9  ;;  %3492 = vmatprep.subr.bf16.mxu1 %v3779_v11  ;;  %v3784_v9 = vld [vmem:[%s5224_s1 + $0x6e0] ss:$12 sps:$4 sm:$0xff]  }
  0x83   :  { %1965 = vmatpush1.bf16.msra.mxu0 %v3763_v7  ;;  %1996 = vmatprep.mubr.bf16.mxu0 %v4413_v31  ;;  %v3798_v31 = vld [vmem:[%s5224_s1 + $0x394] ss:$12 sps:$4 sm:$0xff]   ;;  %v3849_v7 = vld [vmem:[%s5224_s1 + $0x49c] ss:$12 sps:$4 sm:$0xff]  }
  0x84   :  { %1966 = vmatprep.subr.bf16.mxu0 %v3770_v8  ;;  %2292 = vmatmul.mubr.bf16.vlgmr.msra.gmra.mrb[12].mxu1 %v4558_v13  ;;  %v4750_v8 = vld [vmem:[%s5225_s0 + $0x28] ss:$44 sps:$4 sm:$0xff]  }
  0x85   :  { %3493 = vmatpush3.bf16.msra.mxu1 %v3780_v14  ;;  %2332 = vmatprep.mubr.bf16.mxu1 %v4607_v27  ;;  %v3853_v11 = vld [vmem:[%s5224_s1 + $0x4b4] ss:$12 sps:$4 sm:$0xff]  }
  0x86   :  { %3494 = vmatprep.subr.bf16.mxu1 %v3784_v9  ;;  %v3855_v14 = vld [vmem:[%s5224_s1 + $0x4c8] ss:$12 sps:$4 sm:$0xff]  }
  0x87   :  { %1967 = vmatpush1.bf16.msra.mxu0 %v3768_v12  ;;  %v3857_v12 = vld [vmem:[%s5224_s1 + $0x4cc] ss:$12 sps:$4 sm:$0xff]   ;;  %v3863_v9 = vld [vmem:[%s5224_s1 + $0x4fc] ss:$12 sps:$4 sm:$0xff]  }
  0x88   :  { %1968 = vmatprep.subr.bf16.mxu0 %v3775_v15  ;;  %v3858_v15 = vld [vmem:[%s5224_s1 + $0x4e0] ss:$12 sps:$4 sm:$0xff]  }
  0x89   :  { %3495 = vmatpush3.bf16.msra.mxu1 %v3785_v18  ;;  %v3864_v18 = vld [vmem:[%s5224_s1 + $0x510] ss:$12 sps:$4 sm:$0xff]  }
  0x8a   :  { %3496 = vmatprep.subr.bf16.mxu1 %v3789_v19  ;;  %v3869_v19 = vld [vmem:[%s5224_s1 + $0x52c] ss:$12 sps:$4 sm:$0xff]  }
  0x8b   :  { %1969 = vmatpush1.bf16.msra.mxu0 %v3773_v16  ;;  %v3861_v16 = vld [vmem:[%s5224_s1 + $0x4f8] ss:$12 sps:$4 sm:$0xff]  }
  0x8c   :  { %1970 = vmatprep.subr.bf16.mxu0 %v3783_v17  ;;  %v3866_v17 = vld [vmem:[%s5224_s1 + $0x514] ss:$12 sps:$4 sm:$0xff]  }
  0x8d   :  { %3497 = vmatpush3.bf16.msra.mxu1 %v3790_v22  ;;  %v3870_v22 = vld [vmem:[%s5224_s1 + $0x540] ss:$12 sps:$4 sm:$0xff]  }
  0x8e   :  { %3498 = vmatprep.subr.bf16.mxu1 %v3794_v23  ;;  %v3875_v23 = vld [vmem:[%s5224_s1 + $0x55c] ss:$12 sps:$4 sm:$0xff]  }
  0x8f   :  { %1971 = vmatpush1.bf16.msra.mxu0 %v3781_v20  ;;  %v3867_v20 = vld [vmem:[%s5224_s1 + $0x528] ss:$12 sps:$4 sm:$0xff]  }
  0x90   :  { %1972 = vmatprep.subr.bf16.mxu0 %v3788_v21  ;;  %v3872_v21 = vld [vmem:[%s5224_s1 + $0x544] ss:$12 sps:$4 sm:$0xff]  }
  0x91   :  { %3499 = vmatpush3.bf16.msra.mxu1 %v3795_v26  ;;  %v3876_v26 = vld [vmem:[%s5224_s1 + $0x570] ss:$12 sps:$4 sm:$0xff]  }
  0x92   :  { %3500 = vmatprep.subr.bf16.mxu1 %v3799_v28  ;;  %v3881_v28 = vld [vmem:[%s5224_s1 + $0x58c] ss:$12 sps:$4 sm:$0xff]  }
  0x93   :  { %1973 = vmatpush1.bf16.msra.mxu0 %v3786_v24  ;;  %v3873_v24 = vld [vmem:[%s5224_s1 + $0x558] ss:$12 sps:$4 sm:$0xff]  }
  0x94   :  { %1974 = vmatprep.subr.bf16.mxu0 %v3793_v25  ;;  %v3878_v25 = vld [vmem:[%s5224_s1 + $0x574] ss:$12 sps:$4 sm:$0xff]  }
  0x95   :  { %3501 = vmatpush3.bf16.msra.mxu1 %v3800_v30  ;;  %v3884_v30 = vld [vmem:[%s5224_s1 + $0x5a4] ss:$12 sps:$4 sm:$0xff]  }
  0x96   :  { %3502 = vmatprep.subr.bf16.mxu1 %v3804_v32  ;;  %v3887_v32 = vld [vmem:[%s5224_s1 + $0x5bc] ss:$12 sps:$4 sm:$0xff]  }
  0x97   :  { %1975 = vmatpush1.bf16.msra.mxu0 %v3791_v29  ;;  %v3879_v29 = vld [vmem:[%s5224_s1 + $0x588] ss:$12 sps:$4 sm:$0xff]  }
  0x98   :  { %1976 = vmatprep.subr.bf16.mxu0 %v3798_v31  ;;  %v3882_v31 = vld [vmem:[%s5224_s1 + $0x5a0] ss:$12 sps:$4 sm:$0xff]  }
  0x99   :  { %3503 = vmatpush3.bf16.msra.mxu1 %v3805_v35  ;;  %v3888_v35 = vld [vmem:[%s5224_s1 + $0x5d0] ss:$12 sps:$4 sm:$0xff]  }
  0x9a   :  { %3504 = vmatprep.subr.bf16.mxu1 %v3809_v36  ;;  %v3893_v36 = vld [vmem:[%s5224_s1 + $0x5ec] ss:$12 sps:$4 sm:$0xff]  }
  0x9b   :  { %1977 = vmatpush1.bf16.msra.mxu0 %v3796_v33  ;;  %v3885_v33 = vld [vmem:[%s5224_s1 + $0x5b8] ss:$12 sps:$4 sm:$0xff]  }
  0x9c   :  { %1978 = vmatprep.subr.bf16.mxu0 %v3803_v34  ;;  %v3890_v34 = vld [vmem:[%s5224_s1 + $0x5d4] ss:$12 sps:$4 sm:$0xff]  }
  0x9d   :  { %3505 = vmatpush3.bf16.msra.mxu1 %v3810_v39  ;;  %v3891_v39 = vld [vmem:[%s5224_s1 + $0x5e8] ss:$12 sps:$4 sm:$0xff]  }
  0x9e   :  { %3506 = vmatprep.subr.bf16.mxu1 %v3814_v40 }
  0x9f   :  { %1979 = vmatpush1.bf16.msra.mxu0 %v3801_v37 }
  0xa0   :  { %1980 = vmatprep.subr.bf16.mxu0 %v3808_v38 }
  0xa1   :  { %3507 = vmatpush3.bf16.msra.mxu1 %v3815_v42  ;;  %v3896_v42 = vld [vmem:[%s5224_s1 + $0x604] ss:$12 sps:$4 sm:$0xff]  }
  0xa2   :  { %3529 = vmatprep.subr.bf16.mxu1 %v4065_v49 }
  0xa3   :  { %1981 = vmatpush1.bf16.msra.mxu0 %v3806_v41 }
  0xa4   :  { %1982 = vmatprep.subr.bf16.mxu0 %v3813_v44  ;;  %2333 = vmatmul.mubr.bf16.vlgmr.msra.gmra.mrb[16].mxu1 %v4664_v46 }
  0xa5   :  { %3530 = vmatpush3.bf16.msra.mxu1 %v3822_v47  ;;  %3545 = vmatprep.mubr.msk.bf16.mxu1 %vm4066_vm0, %v4065_v49  ;;  %v3894_v47 = vld [vmem:[%s5224_s1 + $0x600] ss:$12 sps:$4 sm:$0xff]  }
  0xa6   :  { %3531 = vmatprep.subr.bf16.mxu1 %v4065_v49 }
  0xa7   :  { %1983 = vmatpush1.bf16.msra.mxu0 %v3811_v45 }
  0xa8   :  { %1984 = vmatprep.subr.bf16.mxu0 %v3818_v48  ;;  %v3899_v48 = vld [vmem:[%s5224_s1 + $0x61c] ss:$12 sps:$4 sm:$0xff]  }
  0xa9   :  { %3532 = vmatpush3.bf16.msra.mxu1 %v3826_v51  ;;  %v3902_v51 = vld [vmem:[%s5224_s1 + $0x634] ss:$12 sps:$4 sm:$0xff]  }
  0xaa   :  { %3533 = vmatprep.subr.bf16.mxu1 %v4065_v49 }
  0xab   :  { %1985 = vmatpush1.bf16.msra.mxu0 %v3816_v50  ;;  %v3897_v50 = vld [vmem:[%s5224_s1 + $0x618] ss:$12 sps:$4 sm:$0xff]  }
  0xac   :  { %1986 = vmatprep.subr.bf16.mxu0 %v3825_v52  ;;  %v3900_v52 = vld [vmem:[%s5224_s1 + $0x630] ss:$12 sps:$4 sm:$0xff]  }
  0xad   :  { %3534 = vmatpush3.bf16.msra.mxu1 %v3830_v54  ;;  %v3908_v54 = vld [vmem:[%s5224_s1 + $0x664] ss:$12 sps:$4 sm:$0xff]  }
  0xae   :  { %3535 = vmatprep.subr.bf16.mxu1 %v4065_v49 }
  0xaf   :  { %1987 = vmatpush1.bf16.msra.mxu0 %v3823_v53  ;;  %v399_v53 = vlaneseq }
  0xb0   :  { %1988 = vmatprep.subr.bf16.mxu0 %v3829_v55 }
  0xb1   :  { %3536 = vmatpush3.bf16.msra.mxu1 %v3834_v57  ;;  %v4870_v55 = vshrl.u32 %v399_v53, 7  ;;  %v3911_v57 = vld [vmem:[%s5224_s1 + $0x67c] ss:$12 sps:$4 sm:$0xff]   ;;  %v3950_v53 = vld [vmem:[%s5224_s1 + $0x7b4] ss:$12 sps:$4 sm:$0xff]  }
  0xb2   :  { %3537 = vmatprep.subr.bf16.mxu1 %v4065_v49 }
  0xb3   :  { %1989 = vmatpush1.bf16.msra.mxu0 %v3827_v56  ;;  %v3906_v56 = vld [vmem:[%s5224_s1 + $0x660] ss:$12 sps:$4 sm:$0xff]  }
  0xb4   :  { %1990 = vmatprep.subr.bf16.mxu0 %v3833_v58  ;;  %v409_v58 = vsub.s32 2, %v4870_v55 }
  0xb5   :  { %3538 = vmatpush3.bf16.msra.mxu1 %v3838_v60  ;;  %v3909_v60 = vld [vmem:[%s5224_s1 + $0x678] ss:$12 sps:$4 sm:$0xff]  }
  0xb6   :  { %3539 = vmatprep.subr.bf16.mxu1 %v4065_v49 }
  0xb7   :  { %1991 = vmatpush1.bf16.msra.mxu0 %v3831_v59  ;;  %v4882_v59 = vld [vmem:[%s5226_s2] sm:$0x7] }
  0xb8   :  { %1992 = vmatprep.subr.bf16.mxu0 %v3837_v62  ;;  %v3914_v62 = vld [vmem:[%s5224_s1 + $0x694] ss:$12 sps:$4 sm:$0xff]  }
  0xb9   :  { %3540 = vmatpush3.bf16.msra.mxu1 %v3842_v0  ;;  %v3912_v0 = vld [vmem:[%s5224_s1 + $0x690] ss:$12 sps:$4 sm:$0xff]  }
  0xba   :  { %3541 = vmatprep.subr.bf16.mxu1 %v4065_v49 }
  0xbb   :  { %1993 = vmatpush1.bf16.msra.mxu0 %v3835_v63  ;;  %v410_v63 = vrot.slane %v4882_v59, %v409_v58  ;;  %v3981_v58 = vld [vmem:[%s5227_s3 + $0x50] ss:$8 sps:$4 sm:$0xff]  }
  0xbc   :  { %1994 = vmatprep.subr.bf16.mxu0 %v3841_v1  ;;  %v3917_v1 = vld [vmem:[%s5224_s1 + $0x6ac] ss:$12 sps:$4 sm:$0xff]  }
  0xbd   :  { %3542 = vmatpush3.bf16.msra.mxu1 %v3846_v3 }
  0xbe   :  { %3543 = vmatprep.subr.bf16.mxu1 %v4065_v49 }
  0xbf   :  { %1995 = vmatpush1.bf16.msra.mxu0 %v3839_v2 }
  0xc0   :  { %2007 = vmatprep.subr.bf16.mxu0 %v3845_v4 }
  0xc1   :  { %3544 = vmatpush3.bf16.msra.mxu1 %v3850_v6 }
  0xc2   :  { %1997 = vmatmul.mubr.bf16.vlgmr.msra.gmra.mrb[0].mxu0 %v4452_v43  ;;  %v3851_v43 = vld [vmem:[%s5224_s1 + $0x4b0] ss:$12 sps:$4 sm:$0xff]  }
  0xc3   :  { %2008 = vmatpush1.bf16.msra.mxu0 %v3843_v5  ;;  %2039 = vmatprep.mubr.bf16.mxu0 %v4509_v61  ;;  %v3860_v61 = vld [vmem:[%s5224_s1 + $0x4e4] ss:$12 sps:$4 sm:$0xff]   ;;  %v3915_v5 = vld [vmem:[%s5224_s1 + $0x6a8] ss:$12 sps:$4 sm:$0xff]  }
  0xc4   :  { %2009 = vmatprep.subr.bf16.mxu0 %v3849_v7  ;;  %3546 = vmatmul.mubr.bf16.vlgmr.msra.gmra.mrb[20].mxu1 %v4750_v8 }
  0xc7   :  { %2010 = vmatpush1.bf16.msra.mxu0 %v3847_v10 }
  0xc8   :  { %2011 = vmatprep.subr.bf16.mxu0 %v3853_v11  ;;  %v3920_v11 = vld [vmem:[%s5224_s1 + $0x6c4] ss:$12 sps:$4 sm:$0xff]  }
  0xcb   :  { %2012 = vmatpush1.bf16.msra.mxu0 %v3851_v43 }
  0xcc   :  { %2013 = vmatprep.subr.bf16.mxu0 %v3857_v12 }
  0xcf   :  { %2014 = vmatpush1.bf16.msra.mxu0 %v3855_v14 }
  0xd0   :  { %2015 = vmatprep.subr.bf16.mxu0 %v3860_v61  ;;  %v3918_v61 = vld [vmem:[%s5224_s1 + $0x6c0] ss:$12 sps:$4 sm:$0xff]  }
  0xd3   :  { %2016 = vmatpush1.bf16.msra.mxu0 %v3858_v15 }
  0xd4   :  { %2017 = vmatprep.subr.bf16.mxu0 %v3863_v9  ;;  %v3923_v9 = vld [vmem:[%s5224_s1 + $0x6dc] ss:$12 sps:$4 sm:$0xff]  }
  0xd7   :  { %2018 = vmatpush1.bf16.msra.mxu0 %v3861_v16  ;;  %v3921_v16 = vld [vmem:[%s5224_s1 + $0x6d8] ss:$12 sps:$4 sm:$0xff]  }
  0xd8   :  { %2019 = vmatprep.subr.bf16.mxu0 %v3866_v17  ;;  %v3926_v17 = vld [vmem:[%s5224_s1 + $0x6f4] ss:$12 sps:$4 sm:$0xff]  }
  0xdb   :  { %2020 = vmatpush1.bf16.msra.mxu0 %v3864_v18  ;;  %v3924_v18 = vld [vmem:[%s5224_s1 + $0x6f0] ss:$12 sps:$4 sm:$0xff]  }
  0xdc   :  { %2021 = vmatprep.subr.bf16.mxu0 %v3869_v19  ;;  %v3929_v19 = vld [vmem:[%s5224_s1 + $0x70c] ss:$12 sps:$4 sm:$0xff]  }
  0xdf   :  { %2022 = vmatpush1.bf16.msra.mxu0 %v3867_v20  ;;  %v3927_v20 = vld [vmem:[%s5224_s1 + $0x708] ss:$12 sps:$4 sm:$0xff]  }
  0xe0   :  { %2023 = vmatprep.subr.bf16.mxu0 %v3872_v21  ;;  %v3932_v21 = vld [vmem:[%s5224_s1 + $0x724] ss:$12 sps:$4 sm:$0xff]  }
  0xe3   :  { %2024 = vmatpush1.bf16.msra.mxu0 %v3870_v22  ;;  %v3930_v22 = vld [vmem:[%s5224_s1 + $0x720] ss:$12 sps:$4 sm:$0xff]  }
  0xe4   :  { %2025 = vmatprep.subr.bf16.mxu0 %v3875_v23  ;;  %v3935_v23 = vld [vmem:[%s5224_s1 + $0x73c] ss:$12 sps:$4 sm:$0xff]  }
  0xe7   :  { %2026 = vmatpush1.bf16.msra.mxu0 %v3873_v24  ;;  %v3933_v24 = vld [vmem:[%s5224_s1 + $0x738] ss:$12 sps:$4 sm:$0xff]  }
  0xe8   :  { %2027 = vmatprep.subr.bf16.mxu0 %v3878_v25  ;;  %v3938_v25 = vld [vmem:[%s5224_s1 + $0x754] ss:$12 sps:$4 sm:$0xff]  }
  0xeb   :  { %2028 = vmatpush1.bf16.msra.mxu0 %v3876_v26  ;;  %v3936_v26 = vld [vmem:[%s5224_s1 + $0x750] ss:$12 sps:$4 sm:$0xff]  }
  0xec   :  { %2029 = vmatprep.subr.bf16.mxu0 %v3881_v28  ;;  %v3966_v28 = vld [vmem:[%s5227_s3] ss:$8 sps:$4 sm:$0xff]  }
  0xef   :  { %2030 = vmatpush1.bf16.msra.mxu0 %v3879_v29  ;;  %v3968_v29 = vld [vmem:[%s5227_s3 + $0x4] ss:$8 sps:$4 sm:$0xff]  }
  0xf0   :  { %2031 = vmatprep.subr.bf16.mxu0 %v3884_v30  ;;  %v3941_v30 = vld [vmem:[%s5224_s1 + $0x76c] ss:$12 sps:$4 sm:$0xff]   ;;  %2690 = vmatprep.subr.bf16.mxu1 %v3968_v29 }
  0xf1   :  { %2691 = vmatpush1.bf16.msra.mxu1 %v3966_v28 }
  0xf3   :  { %2032 = vmatpush1.bf16.msra.mxu0 %v3882_v31  ;;  %v3971_v31 = vld [vmem:[%s5227_s3 + $0x14] ss:$8 sps:$4 sm:$0xff]  }
  0xf4   :  { %2033 = vmatprep.subr.bf16.mxu0 %v3887_v32  ;;  %v3939_v32 = vld [vmem:[%s5224_s1 + $0x768] ss:$12 sps:$4 sm:$0xff]   ;;  %2692 = vmatprep.subr.bf16.mxu1 %v3971_v31 }
  0xf7   :  { %2034 = vmatpush1.bf16.msra.mxu0 %v3885_v33  ;;  %v3420_v37 = vpop.f32.mrb[0].mxu1 }
  0xf8   :  { %2035 = vmatprep.subr.bf16.mxu0 %v3890_v34  ;;  %v3421_v38 = vpop.f32.mrb[1].mxu1 }
  0xf9   :  { %v3422_v40 = vadd.f32 %v3421_v38, %v3420_v37  ;;  %v3423_v41 = vpop.f32.mrb[2].mxu1  ;;  %v3974_v38 = vld [vmem:[%s5227_s3 + $0x24] ss:$8 sps:$4 sm:$0xff]  }
  0xfa   :  { %v3424_v44 = vpop.f32.mrb[3].mxu1 }
  0xfb   :  { %2036 = vmatpush1.bf16.msra.mxu0 %v3888_v35  ;;  %v3425_v45 = vadd.f32 %v3424_v44, %v3423_v41  ;;  %v2171_v2 = vadd.f32 %v3422_v40, %v410_v63  ;;  %v3969_v35 = vld [vmem:[%s5227_s3 + $0x10] ss:$8 sps:$4 sm:$0xff]   ;;  %v3972_v44 = vld [vmem:[%s5227_s3 + $0x20] ss:$8 sps:$4 sm:$0xff]  }
  0xfc   :  { %2037 = vmatprep.subr.bf16.mxu0 %v3893_v36  ;;  %2693 = vmatpush1.bf16.msra.mxu1 %v3969_v35 }
  0xfd   :  { %v2174_v6 = vadd.f32 %v3425_v45, %v410_v63  ;;  %v3942_v45 = vld [vmem:[%s5224_s1 + $0x780] ss:$12 sps:$4 sm:$0xff]   ;;  %2694 = vmatprep.subr.bf16.mxu1 %v3974_v38  ;;  %v3956_v63 = vld [vmem:[%s5224_s1 + $0x7e4] ss:$12 sps:$4 sm:$0xff]  }
  0xff   :  { %2038 = vmatpush1.bf16.msra.mxu0 %v3891_v39  ;;  %v3944_v39 = vld [vmem:[%s5224_s1 + $0x784] ss:$12 sps:$4 sm:$0xff]  }
 0x100   :  { %2050 = vmatprep.subr.bf16.mxu0 %v3896_v42  ;;  %2695 = vmatpush1.bf16.msra.mxu1 %v3972_v44 }
 0x102   :  { %2040 = vmatmul.mubr.bf16.vlgmr.msra.gmra.mrb[0].mxu0 %v4558_v13  ;;  %v3905_v13 = vld [vmem:[%s5224_s1 + $0x64c] ss:$12 sps:$4 sm:$0xff]  }
 0x103   :  { %2051 = vmatpush1.bf16.msra.mxu0 %v3894_v47  ;;  %2082 = vmatprep.mubr.bf16.mxu0 %v4607_v27  ;;  %v3903_v27 = vld [vmem:[%s5224_s1 + $0x648] ss:$12 sps:$4 sm:$0xff]  }
 0x104   :  { %2052 = vmatprep.subr.bf16.mxu0 %v3899_v48  ;;  %v3947_v48 = vld [vmem:[%s5224_s1 + $0x79c] ss:$12 sps:$4 sm:$0xff]  }
 0x107   :  { %2053 = vmatpush1.bf16.msra.mxu0 %v3897_v50  ;;  %v3977_v50 = vld [vmem:[%s5227_s3 + $0x34] ss:$8 sps:$4 sm:$0xff]  }
 0x108   :  { %2054 = vmatprep.subr.bf16.mxu0 %v3902_v51  ;;  %v3945_v51 = vld [vmem:[%s5224_s1 + $0x798] ss:$12 sps:$4 sm:$0xff]   ;;  %2696 = vmatprep.subr.bf16.mxu1 %v3977_v50 }
 0x10b   :  { %2055 = vmatpush1.bf16.msra.mxu0 %v3900_v52  ;;  %v3975_v52 = vld [vmem:[%s5227_s3 + $0x30] ss:$8 sps:$4 sm:$0xff]  }
 0x10c   :  { %2056 = vmatprep.subr.bf16.mxu0 %v3905_v13  ;;  %v3980_v13 = vld [vmem:[%s5227_s3 + $0x44] ss:$8 sps:$4 sm:$0xff]   ;;  %2697 = vmatpush1.bf16.msra.mxu1 %v3975_v52 }
 0x10d   :  { %2698 = vmatprep.subr.bf16.mxu1 %v3980_v13 }
 0x10f   :  { %2057 = vmatpush1.bf16.msra.mxu0 %v3903_v27  ;;  %v4067_v27 = vmov 0  }
 0x110   :  { %2058 = vmatprep.subr.bf16.mxu0 %v3908_v54  ;;  %v3978_v54 = vld [vmem:[%s5227_s3 + $0x40] ss:$8 sps:$4 sm:$0xff]  }
 0x111   :  { %2699 = vmatpush1.bf16.msra.mxu1 %v3978_v54  ;;  %v3993_v54 = vld [vmem:[%s5227_s3 + $0x90] ss:$8 sps:$4 sm:$0xff]  }
 0x113   :  { %2059 = vmatpush1.bf16.msra.mxu0 %v3906_v56  ;;  %v3948_v56 = vld [vmem:[%s5224_s1 + $0x7b0] ss:$12 sps:$4 sm:$0xff]  }
 0x114   :  { %2060 = vmatprep.subr.bf16.mxu0 %v3911_v57  ;;  %v3953_v57 = vld [vmem:[%s5224_s1 + $0x7cc] ss:$12 sps:$4 sm:$0xff]  }
 0x117   :  { %2061 = vmatpush1.bf16.msra.mxu0 %v3909_v60  ;;  %v3442_v3 = vpop.f32.mrb[4].mxu1  ;;  %v3951_v60 = vld [vmem:[%s5224_s1 + $0x7c8] ss:$12 sps:$4 sm:$0xff]  }
 0x118   :  { %2062 = vmatprep.subr.bf16.mxu0 %v3914_v62  ;;  %v3443_v4 = vpop.f32.mrb[5].mxu1  ;;  %v3986_v62 = vld [vmem:[%s5227_s3 + $0x64] ss:$8 sps:$4 sm:$0xff]  }
 0x119   :  { %v3444_v7 = vadd.f32 %v3443_v4, %v3442_v3  ;;  %v3445_v10 = vpop.f32.mrb[6].mxu1  ;;  %v3959_v3 = vld [vmem:[%s5224_s1 + $0x7fc] ss:$12 sps:$4 sm:$0xff]   ;;  %v3987_v4 = vld [vmem:[%s5227_s3 + $0x70] ss:$8 sps:$4 sm:$0xff]  }
 0x11a   :  { %v3446_v43 = vpop.f32.mrb[7].mxu1 }
 0x11b   :  { %2063 = vmatpush1.bf16.msra.mxu0 %v3912_v0  ;;  %v2212_v12 = vadd.f32 %v3444_v7, %v2171_v2  ;;  %v3447_v14 = vadd.f32 %v3446_v43, %v3445_v10  ;;  %v3984_v0 = vld [vmem:[%s5227_s3 + $0x60] ss:$8 sps:$4 sm:$0xff]   ;;  %v3989_v2 = vld [vmem:[%s5227_s3 + $0x74] ss:$8 sps:$4 sm:$0xff]   ;;  %v3965_v43 = vld [vmem:[%s5224_s1 + $0x82c] ss:$12 sps:$4 sm:$0xff]  }
 0x11c   :  { %2064 = vmatprep.subr.bf16.mxu0 %v3917_v1  ;;  %v3954_v1 = vld [vmem:[%s5224_s1 + $0x7e0] ss:$12 sps:$4 sm:$0xff]  }
 0x11d   :  { %v2215_v15 = vadd.f32 %v3447_v14, %v2174_v6  ;;  %v3992_v6 = vld [vmem:[%s5227_s3 + $0x84] ss:$8 sps:$4 sm:$0xff]   ;;  %v3962_v7 = vld [vmem:[%s5224_s1 + $0x814] ss:$12 sps:$4 sm:$0xff]  }
 0x11e   :  { %v3990_v10 = vld [vmem:[%s5227_s3 + $0x80] ss:$8 sps:$4 sm:$0xff]  }
 0x11f   :  { %2065 = vmatpush1.bf16.msra.mxu0 %v3915_v5  ;;  %v3957_v5 = vld [vmem:[%s5224_s1 + $0x7f8] ss:$12 sps:$4 sm:$0xff]  }
 0x120   :  { %2066 = vmatprep.subr.bf16.mxu0 %v3920_v11  ;;  %v3960_v11 = vld [vmem:[%s5224_s1 + $0x810] ss:$12 sps:$4 sm:$0xff]  }
 0x123   :  { %2067 = vmatpush1.bf16.msra.mxu0 %v3918_v61  ;;  %v3963_v61 = vld [vmem:[%s5224_s1 + $0x828] ss:$12 sps:$4 sm:$0xff]  }
 0x124   :  { %2068 = vmatprep.subr.bf16.mxu0 %v3923_v9 }
 0x127   :  { %2069 = vmatpush1.bf16.msra.mxu0 %v3921_v16 }
 0x128   :  { %2070 = vmatprep.subr.bf16.mxu0 %v3926_v17 }
 0x12b   :  { %2071 = vmatpush1.bf16.msra.mxu0 %v3924_v18 }
 0x12c   :  { %2072 = vmatprep.subr.bf16.mxu0 %v3929_v19 }
 0x12f   :  { %2073 = vmatpush1.bf16.msra.mxu0 %v3927_v20 }
 0x130   :  { %2074 = vmatprep.subr.bf16.mxu0 %v3932_v21 }
 0x133   :  { %2075 = vmatpush1.bf16.msra.mxu0 %v3930_v22 }
 0x134   :  { %2076 = vmatprep.subr.bf16.mxu0 %v3935_v23 }
 0x137   :  { %2077 = vmatpush1.bf16.msra.mxu0 %v3933_v24  ;;  %v3464_v33 = vpop.f32.mrb[8].mxu1 }
 0x138   :  { %2078 = vmatprep.subr.bf16.mxu0 %v3938_v25  ;;  %v3465_v34 = vpop.f32.mrb[9].mxu1 }
 0x139   :  { %v3466_v36 = vadd.f32 %v3465_v34, %v3464_v33  ;;  %v3467_v37 = vpop.f32.mrb[10].mxu1 }
 0x13a   :  { %v3468_v40 = vpop.f32.mrb[11].mxu1 }
 0x13b   :  { %2079 = vmatpush1.bf16.msra.mxu0 %v3936_v26  ;;  %v4966_v41 = vadd.f32 %v3466_v36, %v2212_v12  ;;  %v3469_v42 = vadd.f32 %v3468_v40, %v3467_v37 }
 0x13c   :  { %2080 = vmatprep.subr.bf16.mxu0 %v3941_v30 }
 0x13d   :  { %v4974_v47 = vadd.f32 %v3469_v42, %v2215_v15 }
 0x13f   :  { %2081 = vmatpush1.bf16.msra.mxu0 %v3939_v32 }
 0x140   :  { %2093 = vmatprep.subr.bf16.mxu0 %v3944_v39 }
 0x142   :  { %2083 = vmatmul.mubr.bf16.vlgmr.msra.gmra.mrb[0].mxu0 %v4664_v46  ;;  %v3983_v46 = vld [vmem:[%s5227_s3 + $0x54] ss:$8 sps:$4 sm:$0xff]  }
 0x143   :  { %2094 = vmatpush1.bf16.msra.mxu0 %v3942_v45  ;;  %2125 = vmatprep.mubr.bf16.mxu0 %v4067_v27 }
 0x144   :  { %2095 = vmatprep.subr.bf16.mxu0 %v3947_v48  ;;  %2700 = vmatprep.subr.bf16.mxu1 %v3983_v46  ;;  %v3996_v46 = vld [vmem:[%s5227_s3 + $0xa0] ss:$8 sps:$4 sm:$0xff]  }
 0x145   :  { %2701 = vmatpush1.bf16.msra.mxu1 %v3981_v58  ;;  %v3999_v58 = vld [vmem:[%s5227_s3 + $0xb0] ss:$8 sps:$4 sm:$0xff]  }
 0x146   :  { %2702 = vmatprep.subr.bf16.mxu1 %v3986_v62  ;;  %v4002_v62 = vld [vmem:[%s5227_s3 + $0xc0] ss:$8 sps:$4 sm:$0xff]  }
 0x147   :  { %2096 = vmatpush1.bf16.msra.mxu0 %v3945_v51 }
 0x148   :  { %2097 = vmatprep.subr.bf16.mxu0 %v3950_v53  ;;  %v3995_v53 = vld [vmem:[%s5227_s3 + $0x94] ss:$8 sps:$4 sm:$0xff]  }
 0x149   :  { %2703 = vmatpush1.bf16.msra.mxu1 %v3984_v0  ;;  %v4005_v0 = vld [vmem:[%s5227_s3 + $0xd0] ss:$8 sps:$4 sm:$0xff]  }
 0x14a   :  { %2704 = vmatprep.subr.bf16.mxu1 %v3989_v2  ;;  %v4008_v2 = vld [vmem:[%s5227_s3 + $0xe0] ss:$8 sps:$4 sm:$0xff]  }
 0x14b   :  { %2098 = vmatpush1.bf16.msra.mxu0 %v3948_v56  ;;  %v3998_v56 = vld [vmem:[%s5227_s3 + $0xa4] ss:$8 sps:$4 sm:$0xff]  }
 0x14c   :  { %2099 = vmatprep.subr.bf16.mxu0 %v3953_v57  ;;  %v4001_v57 = vld [vmem:[%s5227_s3 + $0xb4] ss:$8 sps:$4 sm:$0xff]  }
 0x14d   :  { %2705 = vmatpush1.bf16.msra.mxu1 %v3987_v4  ;;  %v4011_v4 = vld [vmem:[%s5227_s3 + $0xf0] ss:$8 sps:$4 sm:$0xff]  }
 0x14e   :  { %2706 = vmatprep.subr.bf16.mxu1 %v3992_v6  ;;  %v401_v6 = vsub.s32 0, %v4870_v55 }
 0x14f   :  { %2100 = vmatpush1.bf16.msra.mxu0 %v3951_v60  ;;  %v4004_v60 = vld [vmem:[%s5227_s3 + $0xc4] ss:$8 sps:$4 sm:$0xff]  }
 0x150   :  { %2101 = vmatprep.subr.bf16.mxu0 %v3956_v63  ;;  %v4007_v63 = vld [vmem:[%s5227_s3 + $0xd4] ss:$8 sps:$4 sm:$0xff]  }
 0x151   :  { %2707 = vmatpush1.bf16.msra.mxu1 %v3990_v10  ;;  %v402_v10 = vrot.slane %v4882_v59, %v401_v6 }
 0x152   :  { %2708 = vmatprep.subr.bf16.mxu1 %v3995_v53 }
 0x153   :  { %2102 = vmatpush1.bf16.msra.mxu0 %v3954_v1  ;;  %v4010_v1 = vld [vmem:[%s5227_s3 + $0xe4] ss:$8 sps:$4 sm:$0xff]  }
 0x154   :  { %2103 = vmatprep.subr.bf16.mxu0 %v3959_v3  ;;  %v4013_v3 = vld [vmem:[%s5227_s3 + $0xf4] ss:$8 sps:$4 sm:$0xff]  }
 0x155   :  { %2709 = vmatpush1.bf16.msra.mxu1 %v3993_v54 }
 0x156   :  { %2710 = vmatprep.subr.bf16.mxu1 %v3998_v56 }
 0x157   :  { %2104 = vmatpush1.bf16.msra.mxu0 %v3957_v5  ;;  %v3486_v12 = vpop.f32.mrb[12].mxu1  ;;  %v4016_v5 = vld [vmem:[%s5227_s3 + $0x104] ss:$8 sps:$4 sm:$0xff]  }
 0x158   :  { %2105 = vmatprep.subr.bf16.mxu0 %v3962_v7  ;;  %v3487_v14 = vpop.f32.mrb[13].mxu1  ;;  %v405_v7 = vsub.s32 1, %v4870_v55 }
 0x159   :  { %v3488_v15 = vadd.f32 %v3487_v14, %v3486_v12  ;;  %v3489_v9 = vpop.f32.mrb[14].mxu1  ;;  %2711 = vmatpush1.bf16.msra.mxu1 %v3996_v46  ;;  %v4014_v46 = vld [vmem:[%s5227_s3 + $0x100] ss:$8 sps:$4 sm:$0xff]  }
 0x15a   :  { %v3490_v16 = vpop.f32.mrb[15].mxu1  ;;  %2712 = vmatprep.subr.bf16.mxu1 %v4001_v57  ;;  %v4019_v57 = vld [vmem:[%s5227_s3 + $0x114] ss:$8 sps:$4 sm:$0xff]  }
 0x15b   :  { %2106 = vmatpush1.bf16.msra.mxu0 %v3960_v11  ;;  %v2294_v17 = vadd.f32 %v3488_v15, %v4966_v41  ;;  %v3491_v18 = vadd.f32 %v3490_v16, %v3489_v9  ;;  %v406_v11 = vrot.slane %v4882_v59, %v405_v7 }
 0x15c   :  { %2107 = vmatprep.subr.bf16.mxu0 %v3965_v43 }
 0x15d   :  { %v2297_v19 = vadd.f32 %v3491_v18, %v4974_v47  ;;  %2713 = vmatpush1.bf16.msra.mxu1 %v3999_v58  ;;  %v4017_v58 = vld [vmem:[%s5227_s3 + $0x110] ss:$8 sps:$4 sm:$0xff]  }
 0x15e   :  { %2714 = vmatprep.subr.bf16.mxu1 %v4004_v60  ;;  %v4022_v60 = vld [vmem:[%s5227_s3 + $0x124] ss:$8 sps:$4 sm:$0xff]  }
 0x15f   :  { %2108 = vmatpush1.bf16.msra.mxu0 %v3963_v61 }
 0x161   :  { %2715 = vmatpush1.bf16.msra.mxu1 %v4002_v62  ;;  %v4020_v62 = vld [vmem:[%s5227_s3 + $0x120] ss:$8 sps:$4 sm:$0xff]  }
 0x162   :  { %2126 = vmatmul.mubr.bf16.vlgmr.msra.gmra.mrb[0].mxu0 %v4750_v8  ;;  %2716 = vmatprep.subr.bf16.mxu1 %v4007_v63  ;;  %v4025_v63 = vld [vmem:[%s5227_s3 + $0x134] ss:$8 sps:$4 sm:$0xff]  }
 0x165   :  { %2717 = vmatpush1.bf16.msra.mxu1 %v4005_v0  ;;  %v4023_v0 = vld [vmem:[%s5227_s3 + $0x130] ss:$8 sps:$4 sm:$0xff]  }
 0x166   :  { %2718 = vmatprep.subr.bf16.mxu1 %v4010_v1  ;;  %v4026_v1 = vld [vmem:[%s5228_s5] sm:$0xff]  }
 0x169   :  { %2719 = vmatpush1.bf16.msra.mxu1 %v4008_v2  ;;  %v4027_v2 = vld [vmem:[%s5228_s5 + $0x8] sm:$0xff]  }
 0x16a   :  { %2720 = vmatprep.subr.bf16.mxu1 %v4013_v3  ;;  %v4028_v3 = vld [vmem:[%s5228_s5 + $0x10] sm:$0xff]  }
 0x16d   :  { %2721 = vmatpush1.bf16.msra.mxu1 %v4011_v4  ;;  %v4032_v4 = vld [vmem:[%s5228_s5 + $0x30] sm:$0xff]  }
 0x16e   :  { %2733 = vmatprep.subr.bf16.mxu1 %v4016_v5  ;;  %v4033_v5 = vld [vmem:[%s5228_s5 + $0x38] sm:$0xff]  }
 0x177   :  { %v3508_v20 = vpop.f32.mrb[16].mxu1 }
 0x178   :  { %v3509_v21 = vpop.f32.mrb[17].mxu1 }
 0x179   :  { %v3510_v22 = vadd.f32 %v3509_v21, %v3508_v20  ;;  %v3511_v23 = vpop.f32.mrb[18].mxu1 }
 0x17a   :  { %v3512_v24 = vpop.f32.mrb[19].mxu1 }
 0x17b   :  { %v3513_v25 = vadd.f32 %v3512_v24, %v3511_v23  ;;  %v2335_v26 = vadd.f32 %v3510_v22, %v2294_v17 }
 0x17d   :  { %v2338_v28 = vadd.f32 %v3513_v25, %v2297_v19 }
 0x197   :  { %v2375_v29 = vpop.f32.mrb[20].mxu1 }
 0x198   :  { %v2376_v30 = vadd.f32 %v2375_v29, %v2335_v26  ;;  %v3547_v31 = vpop.f32.mrb[21].mxu1 }
 0x199   :  { %v2378_v32 = vpop.f32.mrb[22].mxu1 }
 0x19a   :  { %v2391_v33 = vmul.f32 10.0, %v2376_v30  ;;  %v2379_v34 = vadd.f32 %v2378_v32, %v2338_v28  ;;  %v3548_v35 = vpop.f32.mrb[23].mxu1  ;;  %v2384_v41 = vmax.f32 %v2376_v30, 0.0 }
 0x19c   :  { %v2399_v36 = vmul.f32 1.442695, %v2391_v33  ;;  %v2394_v37 = vmul.f32 10.0, %v2379_v34  ;;  %v2387_v47 = vmax.f32 %v2379_v34, 0.0 }
 0x19e   :  { %4041 = vpow2.f32 %v2399_v36  ;;  %v2405_v38 = vmul.f32 1.442695, %v2394_v37 }
 0x1a0   :  { %4043 = vpow2.f32 %v2405_v38 }
 0x1a8   :  { %v4042_v8 = vpop.eup %4041 }
 0x1a9   :  { %v3334_v39 = vadd.f32 -1.0, %v4042_v8 }
 0x1aa   :  { %v4044_v40 = vpop.eup %4043 }
 0x1ab   :  { %v2415_v42 = vmul.f32 0.1, %v3334_v39  ;;  %v3337_v44 = vadd.f32 -1.0, %v4044_v40 }
 0x1ad   :  { %v2421_v45 = vmin.f32 %v2415_v42, 0.0  ;;  %v2418_v48 = vmul.f32 0.1, %v3337_v44 }
 0x1af   :  { %v5059_v50 = vadd.f32 %v2421_v45, %v2384_v41  ;;  %v2424_v51 = vmin.f32 %v2418_v48, 0.0 }
 0x1b1   :  { %v5061_v52 = vadd.f32 %v2424_v51, %v2387_v47 }
 0x1b3   :  { %v2433_v13 = vpack.c.bf16 %v5061_v52, %v5059_v50  ;;  %v4029_v50 = vld [vmem:[%s5228_s5 + $0x18] sm:$0xff]   ;;  %v4030_v52 = vld [vmem:[%s5228_s5 + $0x20] sm:$0xff]  }
 0x235   :  { %v2127_v43 = vpop.f32.mrb[0].mxu0 }
 0x236   :  { %v3563_v12 = vadd.f32 %v2127_v43, %v402_v10  ;;  %v2129_v14 = vpop.f32.mrb[1].mxu0  ;;  %v2474_v43 = vld [vmem:[%s5229_s4] sm:$0x3] }
 0x237   :  { %v3564_v61 = vadd.f32 %v2129_v14, %v406_v11  ;;  %v2131_v15 = vpop.f32.mrb[2].mxu0  ;;  %v2483_v14 = vrot.slane %v2474_v43, %v405_v7 }
 0x238   :  { %v2389_v9 = vmul.f32 10.0, %v3563_v12  ;;  %v3565_v16 = vadd.f32 %v2131_v15, %v402_v10  ;;  %v2133_v17 = vpop.f32.mrb[3].mxu0  ;;  %v2382_v39 = vmax.f32 %v3563_v12, 0.0  ;;  %v4034_v10 = vld [vmem:[%s5228_s5 + $0x40] sm:$0xff]   ;;  %v2479_v12 = vrot.slane %v2474_v43, %v401_v6 }
 0x239   :  { %v2390_v18 = vmul.f32 10.0, %v3564_v61  ;;  %v3566_v19 = vadd.f32 %v2133_v17, %v406_v11  ;;  %v2383_v42 = vmax.f32 %v3564_v61, 0.0  ;;  %v4035_v11 = vld [vmem:[%s5228_s5 + $0x48] sm:$0xff]  }
 0x23a   :  { %v2395_v20 = vmul.f32 1.442695, %v2389_v9  ;;  %v2392_v21 = vmul.f32 10.0, %v3565_v16  ;;  %v2385_v40 = vmax.f32 %v3565_v16, 0.0 }
 0x23b   :  { %v2397_v22 = vmul.f32 1.442695, %v2390_v18  ;;  %v2393_v23 = vmul.f32 10.0, %v3566_v19  ;;  %v2386_v44 = vmax.f32 %v3566_v19, 0.0 }
 0x23c   :  { %4045 = vpow2.f32 %v2395_v20  ;;  %v2401_v24 = vmul.f32 1.442695, %v2392_v21 }
 0x23d   :  { %4047 = vpow2.f32 %v2397_v22  ;;  %v2403_v25 = vmul.f32 1.442695, %v2393_v23 }
 0x23e   :  { %4049 = vpow2.f32 %v2401_v24 }
 0x23f   :  { %4051 = vpow2.f32 %v2403_v25 }
 0x246   :  { %v4046_v59 = vpop.eup %4045 }
 0x247   :  { %v4048_v26 = vpop.eup %4047  ;;  %v3332_v28 = vadd.f32 -1.0, %v4046_v59 }
 0x248   :  { %v4050_v29 = vpop.eup %4049  ;;  %v3333_v30 = vadd.f32 -1.0, %v4048_v26 }
 0x249   :  { %v4052_v31 = vpop.eup %4051  ;;  %v2413_v32 = vmul.f32 0.1, %v3332_v28  ;;  %v3335_v33 = vadd.f32 -1.0, %v4050_v29 }
 0x24a   :  { %v2414_v34 = vmul.f32 0.1, %v3333_v30  ;;  %v3336_v35 = vadd.f32 -1.0, %v4052_v31 }
 0x24b   :  { %v2419_v36 = vmin.f32 %v2413_v32, 0.0  ;;  %v2416_v37 = vmul.f32 0.1, %v3335_v33 }
 0x24c   :  { %v2420_v38 = vmin.f32 %v2414_v34, 0.0  ;;  %v2417_v8 = vmul.f32 0.1, %v3336_v35 }
 0x24d   :  { %v2422_v41 = vmin.f32 %v2416_v37, 0.0  ;;  %v2425_v47 = vadd.f32 %v2419_v36, %v2382_v39 }
 0x24e   :  { %v2423_v45 = vmin.f32 %v2417_v8, 0.0  ;;  %v2426_v51 = vadd.f32 %v2420_v38, %v2383_v42 }
 0x24f   :  { %v2428_v48 = vadd.f32 %v2422_v41, %v2385_v40 }
 0x250   :  { %v2429_v53 = vadd.f32 %v2423_v45, %v2386_v44 }
 0x251   :  { %v2431_v54 = vpack.c.bf16 %v2428_v48, %v2425_v47 }
 0x252   :  { %v2432_v56 = vpack.c.bf16 %v2429_v53, %v2426_v51 }
 0x254   :  { %2722 = vmatprep.mubr.bf16.mxu1 %v2432_v56  ;;  %v4036_v56 = vld [vmem:[%s5230_s7] sm:$0xff]  }
 0x255   :  { %2723 = vmatmul.mubr.bf16.vlgmr.msra.gmra.mrb[24].mxu1 %v2431_v54 }
 0x256   :  { %2734 = vmatpush1.bf16.msra.mxu1 %v4014_v46  ;;  %2765 = vmatprep.mubr.bf16.mxu1 %v4067_v27  ;;  %v4037_v46 = vld [vmem:[%s5230_s7 + $0x8] sm:$0xff]  }
 0x257   :  { %2735 = vmatprep.subr.bf16.mxu1 %v4019_v57  ;;  %v4038_v57 = vld [vmem:[%s5230_s7 + $0x10] sm:$0xff]  }
 0x25a   :  { %2736 = vmatpush1.bf16.msra.mxu1 %v4017_v58  ;;  %v4039_v58 = vld [vmem:[%s5230_s7 + $0x18] sm:$0xff]  }
 0x25b   :  { %2737 = vmatprep.subr.bf16.mxu1 %v4022_v60  ;;  %v4040_v60 = vld [vmem:[%s5230_s7 + $0x20] sm:$0xff]  }
 0x25e   :  { %2738 = vmatpush1.bf16.msra.mxu1 %v4020_v62  ;;  %v3383_v62 = vld [vmem:[%s5231_s6] ss:$0 sm:$0xff] }
 0x25f   :  { %2739 = vmatprep.subr.bf16.mxu1 %v4025_v63 }
 0x262   :  { %2740 = vmatpush1.bf16.msra.mxu1 %v4023_v0 }
 0x263   :  { %2901 = vmatprep.subr.bf16.mxu1 %v4067_v27 }
 0x265   :  { %3378 = vmatmul.mubr.msk.bf16.vlgmr.msra.gmra.mrb[24].mxu1 %vm2686_vm1, %v2433_v13  ;;  %v4031_v13 = vld [vmem:[%s5228_s5 + $0x28] sm:$0xff]  }
 0x266   :  { %2902 = vmatpush1.bf16.msra.mxu1 %v4026_v1 }
 0x267   :  { %2903 = vmatprep.subr.bf16.mxu1 %v4067_v27 }
 0x26a   :  { %2904 = vmatpush1.bf16.msra.mxu1 %v4027_v2 }
 0x26b   :  { %2905 = vmatprep.subr.bf16.mxu1 %v4067_v27 }
 0x26e   :  { %2906 = vmatpush1.bf16.msra.mxu1 %v4028_v3 }
 0x26f   :  { %2907 = vmatprep.subr.bf16.mxu1 %v4067_v27 }
 0x272   :  { %2908 = vmatpush1.bf16.msra.mxu1 %v4029_v50 }
 0x273   :  { %2909 = vmatprep.subr.bf16.mxu1 %v4067_v27 }
 0x276   :  { %2910 = vmatpush1.bf16.msra.mxu1 %v4030_v52 }
 0x277   :  { %2911 = vmatprep.subr.bf16.mxu1 %v4067_v27 }
 0x27a   :  { %2912 = vmatpush1.bf16.msra.mxu1 %v4031_v13 }
 0x27b   :  { %2913 = vmatprep.subr.bf16.mxu1 %v4067_v27 }
 0x27e   :  { %2914 = vmatpush1.bf16.msra.mxu1 %v4032_v4 }
 0x27f   :  { %2915 = vmatprep.subr.bf16.mxu1 %v4067_v27 }
 0x282   :  { %2916 = vmatpush1.bf16.msra.mxu1 %v4033_v5 }
 0x283   :  { %2917 = vmatprep.subr.bf16.mxu1 %v4067_v27 }
 0x286   :  { %2918 = vmatpush1.bf16.msra.mxu1 %v4034_v10 }
 0x287   :  { %2919 = vmatprep.subr.bf16.mxu1 %v4067_v27 }
 0x28a   :  { %2920 = vmatpush1.bf16.msra.mxu1 %v4035_v11 }
 0x28b   :  { %3549 = vmatprep.subr.bf16.mxu1 %v4065_v49 }
 0x338   :  { %v2767_v61 = vpop.f32.mrb[24].mxu1 }
 0x339   :  { %v3567_v15 = vadd.f32 %v2767_v61, %v2479_v12  ;;  %v2769_v27 = vpop.f32.mrb[25].mxu1 }
 0x33a   :  { %v3568_v9 = vadd.f32 %v2769_v27, %v2483_v14  ;;  %v2771_v16 = vpop.f32.mrb[26].mxu1 }
 0x33b   :  { %v2780_v17 = vmul.f32 10.0, %v3567_v15  ;;  %v3569_v18 = vadd.f32 %v2771_v16, %v2479_v12  ;;  %v2773_v19 = vpop.f32.mrb[27].mxu1  ;;  %v2776_v8 = vmax.f32 %v3567_v15, 0.0 }
 0x33c   :  { %v2781_v20 = vmul.f32 10.0, %v3568_v9  ;;  %v3570_v21 = vadd.f32 %v2773_v19, %v2483_v14  ;;  %v2777_v41 = vmax.f32 %v3568_v9, 0.0  ;;  %v3397_v19 = vld [vmem:[%s5232_s8] ss:$0 sm:$0xff] }
 0x33d   :  { %v2784_v22 = vmul.f32 1.442695, %v2780_v17  ;;  %v2782_v23 = vmul.f32 10.0, %v3569_v18  ;;  %v2778_v39 = vmax.f32 %v3569_v18, 0.0 }
 0x33e   :  { %v2786_v24 = vmul.f32 1.442695, %v2781_v20  ;;  %v2783_v25 = vmul.f32 10.0, %v3570_v21  ;;  %v2779_v42 = vmax.f32 %v3570_v21, 0.0 }
 0x33f   :  { %4053 = vpow2.f32 %v2784_v22  ;;  %v2788_v59 = vmul.f32 1.442695, %v2782_v23 }
 0x340   :  { %4055 = vpow2.f32 %v2786_v24  ;;  %v2790_v6 = vmul.f32 1.442695, %v2783_v25 }
 0x341   :  { %4057 = vpow2.f32 %v2788_v59 }
 0x342   :  { %4059 = vpow2.f32 %v2790_v6 }
 0x349   :  { %v4054_v55 = vpop.eup %4053 }
 0x34a   :  { %v4056_v7 = vpop.eup %4055  ;;  %v3379_v26 = vadd.f32 -1.0, %v4054_v55 }
 0x34b   :  { %v4058_v28 = vpop.eup %4057  ;;  %v3380_v29 = vadd.f32 -1.0, %v4056_v7 }
 0x34c   :  { %v4060_v30 = vpop.eup %4059  ;;  %v2796_v31 = vmul.f32 0.1, %v3379_v26  ;;  %v3381_v32 = vadd.f32 -1.0, %v4058_v28 }
 0x34d   :  { %v2797_v33 = vmul.f32 0.1, %v3380_v29  ;;  %v3382_v34 = vadd.f32 -1.0, %v4060_v30 }
 0x34e   :  { %v2800_v35 = vmin.f32 %v2796_v31, 0.0  ;;  %v2798_v36 = vmul.f32 0.1, %v3381_v32 }
 0x34f   :  { %v2801_v37 = vmin.f32 %v2797_v33, 0.0  ;;  %v2799_v38 = vmul.f32 0.1, %v3382_v34 }
 0x350   :  { %v2802_v40 = vmin.f32 %v2798_v36, 0.0  ;;  %v2804_v45 = vadd.f32 %v2800_v35, %v2776_v8 }
 0x351   :  { %v2803_v44 = vmin.f32 %v2799_v38, 0.0  ;;  %v2805_v48 = vadd.f32 %v2801_v37, %v2777_v41 }
 0x352   :  { %v2806_v47 = vadd.f32 %v2802_v40, %v2778_v39 }
 0x353   :  { %v2807_v51 = vadd.f32 %v2803_v44, %v2779_v42 }
 0x354   :  { %v2808_v53 = vpack.c.bf16 %v2806_v47, %v2804_v45 }
 0x355   :  { %v2809_v54 = vpack.c.bf16 %v2807_v51, %v2805_v48 }
 0x357   :  { %3394 = vmatprep.mubr.msk.bf16.mxu1 %vm2897_vm2, %v2809_v54 }
 0x358   :  { %2934 = vmatmul.mubr.bf16.vlgmr.msra.gmra.mrb[28].mxu1 %v2808_v53 }
 0x359   :  { %3559 = vmatprep.mubr.msk.bf16.mxu1 %vm4066_vm0, %v4065_v49  ;;  %3550 = vmatpush3.bf16.msra.mxu1 %v4036_v56 }
 0x35a   :  { %3551 = vmatprep.subr.bf16.mxu1 %v4065_v49 }
 0x35d   :  { %3552 = vmatpush3.bf16.msra.mxu1 %v4037_v46 }
 0x35e   :  { %3553 = vmatprep.subr.bf16.mxu1 %v4065_v49 }
 0x361   :  { %3554 = vmatpush3.bf16.msra.mxu1 %v4038_v57 }
 0x362   :  { %3555 = vmatprep.subr.bf16.mxu1 %v4065_v49 }
 0x365   :  { %3556 = vmatpush3.bf16.msra.mxu1 %v4039_v58 }
 0x366   :  { %3557 = vmatprep.subr.bf16.mxu1 %v4065_v49 }
 0x369   :  { %3558 = vmatpush3.bf16.msra.mxu1 %v4040_v60 }
 0x42b   :  { %v2935_v63 = vpop.f32.mrb[28].mxu1 }
 0x42c   :  { %v2936_v0 = vadd.f32 %v3383_v62, %v2935_v63  ;;  %v2937_v1 = vpop.f32.mrb[29].mxu1 }
 0x42d   :  { %v2938_v2 = vpop.f32.mrb[30].mxu1 }
 0x42e   :  { %v2944_v3 = vmul.f32 10.0, %v2936_v0  ;;  %v2939_v50 = vadd.f32 %v3383_v62, %v2938_v2  ;;  %v2940_v52 = vpop.f32.mrb[31].mxu1  ;;  %v2942_v15 = vmax.f32 %v2936_v0, 0.0 }
 0x430   :  { %v2946_v13 = vmul.f32 1.442695, %v2944_v3  ;;  %v2945_v4 = vmul.f32 10.0, %v2939_v50  ;;  %v2943_v27 = vmax.f32 %v2939_v50, 0.0 }
 0x432   :  { %4061 = vpow2.f32 %v2946_v13  ;;  %v2948_v49 = vmul.f32 1.442695, %v2945_v4 }
 0x434   :  { %4063 = vpow2.f32 %v2948_v49 }
 0x43c   :  { %v4062_v5 = vpop.eup %4061 }
 0x43d   :  { %v3395_v10 = vadd.f32 -1.0, %v4062_v5 }
 0x43e   :  { %v4064_v11 = vpop.eup %4063 }
 0x43f   :  { %v2952_v43 = vmul.f32 0.1, %v3395_v10  ;;  %v3396_v12 = vadd.f32 -1.0, %v4064_v11 }
 0x441   :  { %v2954_v14 = vmin.f32 %v2952_v43, 0.0  ;;  %v2953_v61 = vmul.f32 0.1, %v3396_v12 }
 0x443   :  { %v2955_v9 = vmin.f32 %v2953_v61, 0.0  ;;  %v2956_v16 = vadd.f32 %v2954_v14, %v2942_v15 }
 0x445   :  { %v2957_v17 = vadd.f32 %v2955_v9, %v2943_v27 }
 0x447   :  { %v2958_v18 = vpack.c.bf16 %v2957_v17, %v2956_v16 }
 0x449   :  { %3560 = vmatmul.mubr.msk.bf16.vlgmr.msra.gmra.mrb[32].mxu1 %vm3006_vm3, %v2958_v18 }
 0x51c   :  { %v3044_v20 = vpop.f32.mrb[32].mxu1 }
 0x51d   :  { %v3045_v21 = vadd.f32 %v3397_v19, %v3044_v20  ;;  %v3561_v22 = vpop.f32.mrb[33].mxu1 }
 0x51e   :  { %v3047_v23 = vpop.f32.mrb[34].mxu1 }
 0x51f   :  { %3051 = vst [vmem:[%s5233_s9] sm:$0xff] %v3045_v21  ;;  %v3048_v24 = vadd.f32 %v3397_v19, %v3047_v23  ;;  %v3562_v25 = vpop.f32.mrb[35].mxu1 }
 0x521   :  { %3052 = vst [vmem:[%s5233_s9 + $0x8] sm:$0xff] %v3048_v24 }

// kernel: _exmod_forward_jit.4
= control target key start
LH: loop header
LB: loop body
LE: loop exit
PB: predicated region body
PF: predicated region fallthrough
CT: control target
= control target key end

     0   :  { %v826_v1 = vmov 0.0   ;;  %vm827_vm0 = vmmov 0   ;;  %vm494_vm1 = vcmask 523264   ;;  %vm570_vm2 = vcmask 261120   ;;  %s1043_s1 = inlined_call_operand.vmem [shape: bf16[384,128], index: 1, kind: input, shape index: {}]   ;;  %s1044_s0 = inlined_call_operand.vmem [shape: bf16[8,384], index: 0, kind: input, shape index: {}]   ;;  %s1045_s3 = inlined_call_operand.vmem [shape: bf16[128,64], index: 3, kind: input, shape index: {}]   ;;  %s1046_s2 = inlined_call_operand.vmem [shape: f32[1,128], index: 2, kind: input, shape index: {}]   ;;  %s1047_s5 = inlined_call_operand.vmem [shape: bf16[64,32], index: 5, kind: input, shape index: {}]   ;;  %s1048_s4 = inlined_call_operand.vmem [shape: f32[1,64], index: 4, kind: input, shape index: {}]   ;;  %s1049_s7 = inlined_call_operand.vmem [shape: bf16[32,128], index: 7, kind: input, shape index: {}]   ;;  %s1050_s6 = inlined_call_operand.vmem [shape: f32[1,32], index: 6, kind: input, shape index: {}]   ;;  %s1051_s8 = inlined_call_operand.vmem [shape: f32[1,128], index: 8, kind: input, shape index: {}]   ;;  %s1052_s9 = inlined_call_operand.vmem [shape: f32[8,128], index: 9, kind: output, shape index: {}]  }
   0x1   :  { %v779_v0 = vld [vmem:[%s1043_s1 + $0x40] sm:$0xff]   ;;  %717 = vmatprep.subr.bf16.mxu1 %v826_v1  ;;  %733 = vmatprep.mubr.msk.bf16.mxu1 %vm827_vm0, %v826_v1  ;;  %v782_v4 = vld [vmem:[%s1043_s1 + $0x48] sm:$0xff]   ;;  %v785_v7 = vld [vmem:[%s1043_s1 + $0x50] sm:$0xff]  }
   0x2   :  { %v780_v2 = vld [vmem:[%s1043_s1] sm:$0xff]   ;;  %669 = vmatprep.subr.bf16.mxu0 %v779_v0  ;;  %v783_v5 = vld [vmem:[%s1043_s1 + $0x8] sm:$0xff]   ;;  %v786_v8 = vld [vmem:[%s1043_s1 + $0x10] sm:$0xff]  }
   0x3   :  { %v781_v3 = vld [vmem:[%s1043_s1 + $0x80] sm:$0xff]   ;;  %670 = vmatpush3.bf16.msra.mxu0 %v780_v2  ;;  %v784_v6 = vld [vmem:[%s1043_s1 + $0x88] sm:$0xff]   ;;  %v787_v9 = vld [vmem:[%s1043_s1 + $0x90] sm:$0xff]  }
   0x4   :  { %718 = vmatpush3.bf16.msra.mxu1 %v781_v3  ;;  %671 = vmatprep.subr.bf16.mxu0 %v782_v4  ;;  %v788_v10 = vld [vmem:[%s1043_s1 + $0x58] sm:$0xff]   ;;  %v791_v13 = vld [vmem:[%s1043_s1 + $0x60] sm:$0xff]   ;;  %v794_v16 = vld [vmem:[%s1043_s1 + $0x68] sm:$0xff]  }
   0x5   :  { %719 = vmatprep.subr.bf16.mxu1 %v826_v1  ;;  %v789_v11 = vld [vmem:[%s1043_s1 + $0x18] sm:$0xff]   ;;  %v792_v14 = vld [vmem:[%s1043_s1 + $0x20] sm:$0xff]   ;;  %v795_v17 = vld [vmem:[%s1043_s1 + $0x28] sm:$0xff]  }
   0x6   :  { %v790_v12 = vld [vmem:[%s1043_s1 + $0x98] sm:$0xff]   ;;  %v793_v15 = vld [vmem:[%s1043_s1 + $0xa0] sm:$0xff]   ;;  %v796_v18 = vld [vmem:[%s1043_s1 + $0xa8] sm:$0xff]  }
   0x7   :  { %672 = vmatpush3.bf16.msra.mxu0 %v783_v5  ;;  %v797_v19 = vld [vmem:[%s1043_s1 + $0x70] sm:$0xff]   ;;  %v33_v22 = vld [vmem:[%s1044_s0] sm:$0xff]  ;;  %v800_v23 = vld [vmem:[%s1043_s1 + $0x78] sm:$0xff]  }
   0x8   :  { %720 = vmatpush3.bf16.msra.mxu1 %v784_v6  ;;  %673 = vmatprep.subr.bf16.mxu0 %v785_v7  ;;  %v798_v20 = vld [vmem:[%s1043_s1 + $0x30] sm:$0xff]   ;;  %v621_v24 = vcombine.high %v33_v22, %v33_v22  ;;  %v801_v25 = vld [vmem:[%s1043_s1 + $0x38] sm:$0xff]   ;;  %v620_v27 = vcombine.low %v33_v22, %v33_v22  ;;  %v804_v28 = vld [vmem:[%s1044_s0 + $0x8] ss:$0 sps:$4 sm:$0xff]  }
   0x9   :  { %721 = vmatprep.subr.bf16.mxu1 %v826_v1  ;;  %v799_v21 = vld [vmem:[%s1043_s1 + $0xb0] sm:$0xff]   ;;  %v805_v26 = vld [vmem:[%s1043_s1 + $0xb8] sm:$0xff]   ;;  %v806_v29 = vld [vmem:[%s1045_s3] sm:$0xff]  }
   0xa   :  { %277 = vmatprep.mubr.bf16.mxu0 %v621_v24  ;;  %v807_v30 = vld [vmem:[%s1045_s3 + $0x8] sm:$0xff]   ;;  %v808_v31 = vld [vmem:[%s1045_s3 + $0x10] sm:$0xff]   ;;  %v809_v32 = vld [vmem:[%s1045_s3 + $0x18] sm:$0xff]  }
   0xb   :  { %674 = vmatpush3.bf16.msra.mxu0 %v786_v8  ;;  %v810_v33 = vld [vmem:[%s1045_s3 + $0x20] sm:$0xff]   ;;  %v811_v34 = vld [vmem:[%s1045_s3 + $0x28] sm:$0xff]   ;;  %v812_v35 = vld [vmem:[%s1045_s3 + $0x30] sm:$0xff]  }
   0xc   :  { %722 = vmatpush3.bf16.msra.mxu1 %v787_v9  ;;  %675 = vmatprep.subr.bf16.mxu0 %v788_v10  ;;  %v813_v36 = vld [vmem:[%s1045_s3 + $0x38] sm:$0xff]   ;;  %v619_v39 = vld [vmem:[%s1046_s2] ss:$0 sm:$0xff]  ;;  %v815_v59 = vld [vmem:[%s1047_s5 + $0x8] sm:$0xff]  }
   0xd   :  { %723 = vmatprep.subr.bf16.mxu1 %v826_v1  ;;  %v814_v58 = vld [vmem:[%s1047_s5] sm:$0xff]   ;;  %v816_v60 = vld [vmem:[%s1047_s5 + $0x10] sm:$0xff]   ;;  %v817_v61 = vld [vmem:[%s1047_s5 + $0x18] sm:$0xff]  }
   0xe   :  { %v648_v62 = vld [vmem:[%s1048_s4] ss:$0 sm:$0xff] }
   0xf   :  { %676 = vmatpush3.bf16.msra.mxu0 %v789_v11 }
  0x10   :  { %724 = vmatpush3.bf16.msra.mxu1 %v790_v12  ;;  %677 = vmatprep.subr.bf16.mxu0 %v791_v13 }
  0x11   :  { %725 = vmatprep.subr.bf16.mxu1 %v826_v1 }
  0x13   :  { %678 = vmatpush3.bf16.msra.mxu0 %v792_v14  ;;  %v818_v14 = vld [vmem:[%s1049_s7] sm:$0xff]  }
  0x14   :  { %726 = vmatpush3.bf16.msra.mxu1 %v793_v15  ;;  %679 = vmatprep.subr.bf16.mxu0 %v794_v16  ;;  %v819_v15 = vld [vmem:[%s1049_s7 + $0x8] sm:$0xff]   ;;  %v658_v16 = vld [vmem:[%s1050_s6] ss:$0 sm:$0xff] }
  0x15   :  { %727 = vmatprep.subr.bf16.mxu1 %v826_v1 }
  0x17   :  { %680 = vmatpush3.bf16.msra.mxu0 %v795_v17 }
  0x18   :  { %728 = vmatpush3.bf16.msra.mxu1 %v796_v18  ;;  %681 = vmatprep.subr.bf16.mxu0 %v797_v19 }
  0x19   :  { %729 = vmatprep.subr.bf16.mxu1 %v826_v1 }
  0x1b   :  { %682 = vmatpush3.bf16.msra.mxu0 %v798_v20 }
  0x1c   :  { %730 = vmatpush3.bf16.msra.mxu1 %v799_v21  ;;  %683 = vmatprep.subr.bf16.mxu0 %v800_v23 }
  0x1d   :  { %731 = vmatprep.subr.bf16.mxu1 %v826_v1 }
  0x1f   :  { %684 = vmatpush3.bf16.msra.mxu0 %v801_v25 }
  0x20   :  { %732 = vmatpush3.bf16.msra.mxu1 %v805_v26  ;;  %737 = vmatprep.subr.bf16.mxu0 %v826_v1 }
  0x21   :  { %757 = vmatprep.subr.bf16.mxu1 %v826_v1 }
  0x22   :  { %278 = vmatmul.mubr.bf16.vlgmr.msra.gmra.mrb[0].mxu0 %v620_v27 }
  0x23   :  { %734 = vmatmul.mubr.bf16.vlgmr.msra.gmra.mrb[0].mxu1 %v804_v28  ;;  %753 = vmatprep.mubr.msk.bf16.mxu0 %vm827_vm0, %v826_v1 }
  0x24   :  { %765 = vmatprep.mubr.msk.bf16.mxu1 %vm827_vm0, %v826_v1  ;;  %738 = vmatpush3.bf16.msra.mxu0 %v806_v29 }
  0x25   :  { %739 = vmatprep.subr.bf16.mxu0 %v826_v1  ;;  %758 = vmatpush3.bf16.msra.mxu1 %v814_v58 }
  0x26   :  { %759 = vmatprep.subr.bf16.mxu1 %v826_v1 }
  0x28   :  { %740 = vmatpush3.bf16.msra.mxu0 %v807_v30  ;;  %v665_v30 = vld [vmem:[%s1051_s8] ss:$0 sm:$0xff] }
  0x29   :  { %741 = vmatprep.subr.bf16.mxu0 %v826_v1  ;;  %760 = vmatpush3.bf16.msra.mxu1 %v815_v59 }
  0x2a   :  { %761 = vmatprep.subr.bf16.mxu1 %v826_v1 }
  0x2c   :  { %742 = vmatpush3.bf16.msra.mxu0 %v808_v31 }
  0x2d   :  { %743 = vmatprep.subr.bf16.mxu0 %v826_v1  ;;  %762 = vmatpush3.bf16.msra.mxu1 %v816_v60 }
  0x2e   :  { %763 = vmatprep.subr.bf16.mxu1 %v826_v1 }
  0x30   :  { %744 = vmatpush3.bf16.msra.mxu0 %v809_v32 }
  0x31   :  { %745 = vmatprep.subr.bf16.mxu0 %v826_v1  ;;  %764 = vmatpush3.bf16.msra.mxu1 %v817_v61 }
  0x32   :  { %769 = vmatprep.subr.bf16.mxu1 %v826_v1 }
  0x34   :  { %746 = vmatpush3.bf16.msra.mxu0 %v810_v33 }
  0x35   :  { %747 = vmatprep.subr.bf16.mxu0 %v826_v1 }
  0x38   :  { %748 = vmatpush3.bf16.msra.mxu0 %v811_v34 }
  0x39   :  { %749 = vmatprep.subr.bf16.mxu0 %v826_v1 }
  0x3c   :  { %750 = vmatpush3.bf16.msra.mxu0 %v812_v35 }
  0x3d   :  { %751 = vmatprep.subr.bf16.mxu0 %v826_v1 }
  0x40   :  { %752 = vmatpush3.bf16.msra.mxu0 %v813_v36 }
  0xf5   :  { %v685_v37 = vpop.f32.mrb[0].mxu0 }
  0xf6   :  { %v686_v38 = vpop.f32.mrb[1].mxu0  ;;  %v319_v40 = vpop.f32.mrb[0].mxu1 }
  0xf7   :  { %v687_v41 = vadd.f32 %v686_v38, %v685_v37  ;;  %v688_v42 = vpop.f32.mrb[2].mxu0  ;;  %v735_v43 = vpop.f32.mrb[1].mxu1 }
  0xf8   :  { %v689_v44 = vpop.f32.mrb[3].mxu0  ;;  %v322_v45 = vpop.f32.mrb[2].mxu1 }
  0xf9   :  { %v280_v46 = vadd.f32 %v687_v41, %v619_v39  ;;  %v736_v47 = vpop.f32.mrb[3].mxu1 }
  0xfb   :  { %v320_v48 = vadd.f32 %v319_v40, %v280_v46 }
  0xfd   :  { %v327_v49 = vmul.f32 10.0, %v320_v48  ;;  %v325_v54 = vmax.f32 %v320_v48, 0.0 }
  0xff   :  { %v328_v50 = vmul.f32 1.442695, %v327_v49 }
 0x101   :  { %820 = vpow2.f32 %v328_v50 }
 0x10b   :  { %v821_v51 = vpop.eup %820 }
 0x10c   :  { %v647_v52 = vadd.f32 -1.0, %v821_v51 }
 0x10e   :  { %v331_v53 = vmul.f32 0.1, %v647_v52 }
 0x110   :  { %v332_v55 = vmin.f32 %v331_v53, 0.0 }
 0x112   :  { %v333_v56 = vadd.f32 %v332_v55, %v325_v54 }
 0x114   :  { %v334_v57 = vpack.c.bf16 %v333_v56, %v333_v56 }
 0x116   :  { %754 = vmatmul.mubr.bf16.vlgmr.msra.gmra.mrb[4].mxu0 %v334_v57 }
 0x1e9   :  { %v440_v63 = vpop.f32.mrb[4].mxu0 }
 0x1ea   :  { %v441_v0 = vadd.f32 %v648_v62, %v440_v63  ;;  %v755_v2 = vpop.f32.mrb[5].mxu0 }
 0x1eb   :  { %v443_v3 = vpop.f32.mrb[6].mxu0 }
 0x1ec   :  { %v447_v4 = vmul.f32 10.0, %v441_v0  ;;  %v756_v5 = vpop.f32.mrb[7].mxu0  ;;  %v446_v10 = vmax.f32 %v441_v0, 0.0 }
 0x1ee   :  { %v448_v6 = vmul.f32 1.442695, %v447_v4 }
 0x1f0   :  { %822 = vpow2.f32 %v448_v6 }
 0x1fa   :  { %v823_v7 = vpop.eup %822 }
 0x1fb   :  { %v657_v8 = vadd.f32 -1.0, %v823_v7 }
 0x1fd   :  { %v451_v9 = vmul.f32 0.1, %v657_v8 }
 0x1ff   :  { %v452_v11 = vmin.f32 %v451_v9, 0.0 }
 0x201   :  { %v453_v12 = vadd.f32 %v452_v11, %v446_v10 }
 0x203   :  { %v454_v13 = vpack.c.bf16 %v453_v12, %v453_v12 }
 0x205   :  { %766 = vmatmul.mubr.msk.bf16.vlgmr.msra.gmra.mrb[4].mxu1 %vm494_vm1, %v454_v13 }
 0x206   :  { %773 = vmatprep.mubr.msk.bf16.mxu1 %vm827_vm0, %v826_v1  ;;  %770 = vmatpush3.bf16.msra.mxu1 %v818_v14 }
 0x207   :  { %771 = vmatprep.subr.bf16.mxu1 %v826_v1 }
 0x20a   :  { %772 = vmatpush3.bf16.msra.mxu1 %v819_v15 }
 0x2d8   :  { %v532_v17 = vpop.f32.mrb[4].mxu1 }
 0x2d9   :  { %v533_v18 = vadd.f32 %v658_v16, %v532_v17  ;;  %v767_v19 = vpop.f32.mrb[5].mxu1 }
 0x2da   :  { %v535_v20 = vpop.f32.mrb[6].mxu1 }
 0x2db   :  { %v539_v21 = vmul.f32 10.0, %v533_v18  ;;  %v768_v22 = vpop.f32.mrb[7].mxu1  ;;  %v538_v26 = vmax.f32 %v533_v18, 0.0 }
 0x2dd   :  { %v540_v23 = vmul.f32 1.442695, %v539_v21 }
 0x2df   :  { %824 = vpow2.f32 %v540_v23 }
 0x2e9   :  { %v825_v24 = vpop.eup %824 }
 0x2ea   :  { %v664_v25 = vadd.f32 -1.0, %v825_v24 }
 0x2ec   :  { %v543_v1 = vmul.f32 0.1, %v664_v25 }
 0x2ee   :  { %v544_v27 = vmin.f32 %v543_v1, 0.0 }
 0x2f0   :  { %v545_v28 = vadd.f32 %v544_v27, %v538_v26 }
 0x2f2   :  { %v546_v29 = vpack.c.bf16 %v545_v28, %v545_v28 }
 0x2f4   :  { %774 = vmatmul.mubr.msk.bf16.vlgmr.msra.gmra.mrb[8].mxu1 %vm570_vm2, %v546_v29 }
 0x3c7   :  { %v608_v31 = vpop.f32.mrb[8].mxu1 }
 0x3c8   :  { %v609_v32 = vadd.f32 %v665_v30, %v608_v31  ;;  %v775_v33 = vpop.f32.mrb[9].mxu1 }
 0x3c9   :  { %v611_v34 = vpop.f32.mrb[10].mxu1 }
 0x3ca   :  { %614 = vst [vmem:[%s1052_s9] sm:$0xff] %v609_v32  ;;  %v776_v35 = vpop.f32.mrb[11].mxu1 }

// kernel: _exmod_forward_jit.5
= control target key start
LH: loop header
LB: loop body
LE: loop exit
PB: predicated region body
PF: predicated region fallthrough
CT: control target
= control target key end

     0   :  { %v740_v1 = vmov 0.0   ;;  %vm741_vm0 = vmmov 0   ;;  %vm374_vm1 = vcmask 523264   ;;  %vm450_vm2 = vcmask 261120   ;;  %s929_s1 = inlined_call_operand.vmem [shape: bf16[384,64], index: 1, kind: input, shape index: {}]   ;;  %s930_s0 = inlined_call_operand.vmem [shape: bf16[8,384], index: 0, kind: input, shape index: {}]   ;;  %s931_s3 = inlined_call_operand.vmem [shape: bf16[64,32], index: 3, kind: input, shape index: {}]   ;;  %s932_s2 = inlined_call_operand.vmem [shape: f32[1,64], index: 2, kind: input, shape index: {}]   ;;  %s933_s5 = inlined_call_operand.vmem [shape: bf16[32,16], index: 5, kind: input, shape index: {}]   ;;  %s934_s4 = inlined_call_operand.vmem [shape: f32[1,32], index: 4, kind: input, shape index: {}]   ;;  %s935_s7 = inlined_call_operand.vmem [shape: bf16[16,128], index: 7, kind: input, shape index: {}]   ;;  %s936_s6 = inlined_call_operand.vmem [shape: f32[1,16], index: 6, kind: input, shape index: {}]   ;;  %s937_s8 = inlined_call_operand.vmem [shape: f32[1,128], index: 8, kind: input, shape index: {}]   ;;  %s938_s9 = inlined_call_operand.vmem [shape: f32[8,128], index: 9, kind: output, shape index: {}]  }
   0x1   :  { %v700_v0 = vld [vmem:[%s929_s1 + $0x40] sm:$0xff]   ;;  %652 = vmatprep.subr.bf16.mxu1 %v740_v1  ;;  %668 = vmatprep.mubr.msk.bf16.mxu1 %vm741_vm0, %v740_v1  ;;  %v703_v4 = vld [vmem:[%s929_s1 + $0x48] sm:$0xff]   ;;  %v706_v7 = vld [vmem:[%s929_s1 + $0x50] sm:$0xff]   ;;  %vm518_vm3 = vcmask 130048  }
   0x2   :  { %v701_v2 = vld [vmem:[%s929_s1] sm:$0xff]   ;;  %611 = vmatprep.subr.bf16.mxu0 %v700_v0  ;;  %v704_v5 = vld [vmem:[%s929_s1 + $0x8] sm:$0xff]   ;;  %v707_v8 = vld [vmem:[%s929_s1 + $0x10] sm:$0xff]  }
   0x3   :  { %v702_v3 = vld [vmem:[%s929_s1 + $0x80] sm:$0xff]   ;;  %612 = vmatpush3.bf16.msra.mxu0 %v701_v2  ;;  %v705_v6 = vld [vmem:[%s929_s1 + $0x88] sm:$0xff]   ;;  %v708_v9 = vld [vmem:[%s929_s1 + $0x90] sm:$0xff]  }
   0x4   :  { %653 = vmatpush3.bf16.msra.mxu1 %v702_v3  ;;  %613 = vmatprep.subr.bf16.mxu0 %v703_v4  ;;  %v709_v10 = vld [vmem:[%s929_s1 + $0x58] sm:$0xff]   ;;  %v712_v13 = vld [vmem:[%s929_s1 + $0x60] sm:$0xff]   ;;  %v715_v16 = vld [vmem:[%s929_s1 + $0x68] sm:$0xff]  }
   0x5   :  { %654 = vmatprep.subr.bf16.mxu1 %v740_v1  ;;  %v710_v11 = vld [vmem:[%s929_s1 + $0x18] sm:$0xff]   ;;  %v713_v14 = vld [vmem:[%s929_s1 + $0x20] sm:$0xff]   ;;  %v716_v17 = vld [vmem:[%s929_s1 + $0x28] sm:$0xff]  }
   0x6   :  { %v711_v12 = vld [vmem:[%s929_s1 + $0x98] sm:$0xff]   ;;  %v714_v15 = vld [vmem:[%s929_s1 + $0xa0] sm:$0xff]   ;;  %v717_v18 = vld [vmem:[%s929_s1 + $0xa8] sm:$0xff]  }
   0x7   :  { %614 = vmatpush3.bf16.msra.mxu0 %v704_v5  ;;  %v718_v19 = vld [vmem:[%s929_s1 + $0x70] sm:$0xff]   ;;  %v33_v22 = vld [vmem:[%s930_s0] sm:$0xff]  ;;  %v721_v23 = vld [vmem:[%s929_s1 + $0x78] sm:$0xff]  }
   0x8   :  { %655 = vmatpush3.bf16.msra.mxu1 %v705_v6  ;;  %615 = vmatprep.subr.bf16.mxu0 %v706_v7  ;;  %v719_v20 = vld [vmem:[%s929_s1 + $0x30] sm:$0xff]   ;;  %v569_v24 = vcombine.high %v33_v22, %v33_v22  ;;  %v722_v25 = vld [vmem:[%s929_s1 + $0x38] sm:$0xff]   ;;  %v568_v27 = vcombine.low %v33_v22, %v33_v22  ;;  %v725_v28 = vld [vmem:[%s930_s0 + $0x8] ss:$0 sps:$4 sm:$0xff]  }
   0x9   :  { %656 = vmatprep.subr.bf16.mxu1 %v740_v1  ;;  %v720_v21 = vld [vmem:[%s929_s1 + $0xb0] sm:$0xff]   ;;  %v726_v26 = vld [vmem:[%s929_s1 + $0xb8] sm:$0xff]   ;;  %v727_v29 = vld [vmem:[%s931_s3] sm:$0xff]  }
   0xa   :  { %277 = vmatprep.mubr.bf16.mxu0 %v569_v24  ;;  %v728_v30 = vld [vmem:[%s931_s3 + $0x8] sm:$0xff]   ;;  %v729_v31 = vld [vmem:[%s931_s3 + $0x10] sm:$0xff]   ;;  %v730_v32 = vld [vmem:[%s931_s3 + $0x18] sm:$0xff]  }
   0xb   :  { %616 = vmatpush3.bf16.msra.mxu0 %v707_v8  ;;  %v567_v35 = vld [vmem:[%s932_s2] ss:$0 sm:$0xff]  ;;  %v732_v55 = vld [vmem:[%s933_s5 + $0x8] sm:$0xff]  }
   0xc   :  { %657 = vmatpush3.bf16.msra.mxu1 %v708_v9  ;;  %617 = vmatprep.subr.bf16.mxu0 %v709_v10  ;;  %v731_v54 = vld [vmem:[%s933_s5] sm:$0xff]  }
   0xd   :  { %658 = vmatprep.subr.bf16.mxu1 %v740_v1  ;;  %v596_v56 = vld [vmem:[%s934_s4] ss:$0 sm:$0xff] }
   0xe   :  { %v733_v8 = vld [vmem:[%s935_s7] sm:$0xff]  }
   0xf   :  { %618 = vmatpush3.bf16.msra.mxu0 %v710_v11  ;;  %v603_v9 = vld [vmem:[%s936_s6] ss:$0 sm:$0xff] }
  0x10   :  { %659 = vmatpush3.bf16.msra.mxu1 %v711_v12  ;;  %619 = vmatprep.subr.bf16.mxu0 %v712_v13 }
  0x11   :  { %660 = vmatprep.subr.bf16.mxu1 %v740_v1 }
  0x13   :  { %620 = vmatpush3.bf16.msra.mxu0 %v713_v14 }
  0x14   :  { %661 = vmatpush3.bf16.msra.mxu1 %v714_v15  ;;  %621 = vmatprep.subr.bf16.mxu0 %v715_v16 }
  0x15   :  { %662 = vmatprep.subr.bf16.mxu1 %v740_v1 }
  0x17   :  { %622 = vmatpush3.bf16.msra.mxu0 %v716_v17 }
  0x18   :  { %663 = vmatpush3.bf16.msra.mxu1 %v717_v18  ;;  %623 = vmatprep.subr.bf16.mxu0 %v718_v19 }
  0x19   :  { %664 = vmatprep.subr.bf16.mxu1 %v740_v1 }
  0x1b   :  { %624 = vmatpush3.bf16.msra.mxu0 %v719_v20 }
  0x1c   :  { %665 = vmatpush3.bf16.msra.mxu1 %v720_v21  ;;  %625 = vmatprep.subr.bf16.mxu0 %v721_v23  ;;  %v608_v23 = vld [vmem:[%s937_s8] ss:$0 sm:$0xff] }
  0x1d   :  { %666 = vmatprep.subr.bf16.mxu1 %v740_v1 }
  0x1f   :  { %626 = vmatpush3.bf16.msra.mxu0 %v722_v25 }
  0x20   :  { %667 = vmatpush3.bf16.msra.mxu1 %v726_v26  ;;  %672 = vmatprep.subr.bf16.mxu0 %v740_v1 }
  0x21   :  { %684 = vmatprep.subr.bf16.mxu1 %v740_v1 }
  0x22   :  { %278 = vmatmul.mubr.bf16.vlgmr.msra.gmra.mrb[0].mxu0 %v568_v27 }
  0x23   :  { %669 = vmatmul.mubr.bf16.vlgmr.msra.gmra.mrb[0].mxu1 %v725_v28  ;;  %680 = vmatprep.mubr.msk.bf16.mxu0 %vm741_vm0, %v740_v1 }
  0x24   :  { %688 = vmatprep.mubr.msk.bf16.mxu1 %vm741_vm0, %v740_v1  ;;  %673 = vmatpush3.bf16.msra.mxu0 %v727_v29 }
  0x25   :  { %674 = vmatprep.subr.bf16.mxu0 %v740_v1  ;;  %685 = vmatpush3.bf16.msra.mxu1 %v731_v54 }
  0x26   :  { %686 = vmatprep.subr.bf16.mxu1 %v740_v1 }
  0x28   :  { %675 = vmatpush3.bf16.msra.mxu0 %v728_v30 }
  0x29   :  { %676 = vmatprep.subr.bf16.mxu0 %v740_v1  ;;  %687 = vmatpush3.bf16.msra.mxu1 %v732_v55 }
  0x2a   :  { %692 = vmatprep.subr.bf16.mxu1 %v740_v1 }
  0x2c   :  { %677 = vmatpush3.bf16.msra.mxu0 %v729_v31 }
  0x2d   :  { %678 = vmatprep.subr.bf16.mxu0 %v740_v1 }
  0x30   :  { %679 = vmatpush3.bf16.msra.mxu0 %v730_v32 }
  0xf5   :  { %v627_v33 = vpop.f32.mrb[0].mxu0 }
  0xf6   :  { %v628_v34 = vpop.f32.mrb[1].mxu0  ;;  %v319_v36 = vpop.f32.mrb[0].mxu1 }
  0xf7   :  { %v629_v37 = vadd.f32 %v628_v34, %v627_v33  ;;  %v630_v38 = vpop.f32.mrb[2].mxu0  ;;  %v670_v39 = vpop.f32.mrb[1].mxu1 }
  0xf8   :  { %v631_v40 = vpop.f32.mrb[3].mxu0  ;;  %v322_v41 = vpop.f32.mrb[2].mxu1 }
  0xf9   :  { %v280_v42 = vadd.f32 %v629_v37, %v567_v35  ;;  %v671_v43 = vpop.f32.mrb[3].mxu1 }
  0xfb   :  { %v320_v44 = vadd.f32 %v319_v36, %v280_v42 }
  0xfd   :  { %v327_v45 = vmul.f32 10.0, %v320_v44  ;;  %v325_v50 = vmax.f32 %v320_v44, 0.0 }
  0xff   :  { %v328_v46 = vmul.f32 1.442695, %v327_v45 }
 0x101   :  { %734 = vpow2.f32 %v328_v46 }
 0x10b   :  { %v735_v47 = vpop.eup %734 }
 0x10c   :  { %v595_v48 = vadd.f32 -1.0, %v735_v47 }
 0x10e   :  { %v331_v49 = vmul.f32 0.1, %v595_v48 }
 0x110   :  { %v332_v51 = vmin.f32 %v331_v49, 0.0 }
 0x112   :  { %v333_v52 = vadd.f32 %v332_v51, %v325_v50 }
 0x114   :  { %v334_v53 = vpack.c.bf16 %v333_v52, %v333_v52 }
 0x116   :  { %681 = vmatmul.mubr.msk.bf16.vlgmr.msra.gmra.mrb[4].mxu0 %vm374_vm1, %v334_v53 }
 0x1e9   :  { %v412_v57 = vpop.f32.mrb[4].mxu0 }
 0x1ea   :  { %v413_v58 = vadd.f32 %v596_v56, %v412_v57  ;;  %v682_v59 = vpop.f32.mrb[5].mxu0 }
 0x1eb   :  { %v415_v60 = vpop.f32.mrb[6].mxu0 }
 0x1ec   :  { %v419_v61 = vmul.f32 10.0, %v413_v58  ;;  %v683_v62 = vpop.f32.mrb[7].mxu0  ;;  %v418_v4 = vmax.f32 %v413_v58, 0.0 }
 0x1ee   :  { %v420_v63 = vmul.f32 1.442695, %v419_v61 }
 0x1f0   :  { %736 = vpow2.f32 %v420_v63 }
 0x1fa   :  { %v737_v0 = vpop.eup %736 }
 0x1fb   :  { %v602_v2 = vadd.f32 -1.0, %v737_v0 }
 0x1fd   :  { %v423_v3 = vmul.f32 0.1, %v602_v2 }
 0x1ff   :  { %v424_v5 = vmin.f32 %v423_v3, 0.0 }
 0x201   :  { %v425_v6 = vadd.f32 %v424_v5, %v418_v4 }
 0x203   :  { %v426_v7 = vpack.c.bf16 %v425_v6, %v425_v6 }
 0x205   :  { %689 = vmatmul.mubr.msk.bf16.vlgmr.msra.gmra.mrb[4].mxu1 %vm450_vm2, %v426_v7 }
 0x206   :  { %694 = vmatprep.mubr.msk.bf16.mxu1 %vm741_vm0, %v740_v1  ;;  %693 = vmatpush3.bf16.msra.mxu1 %v733_v8 }
 0x2d8   :  { %v488_v10 = vpop.f32.mrb[4].mxu1 }
 0x2d9   :  { %v489_v11 = vadd.f32 %v603_v9, %v488_v10  ;;  %v690_v12 = vpop.f32.mrb[5].mxu1 }
 0x2da   :  { %v491_v13 = vpop.f32.mrb[6].mxu1 }
 0x2db   :  { %v495_v14 = vmul.f32 10.0, %v489_v11  ;;  %v691_v15 = vpop.f32.mrb[7].mxu1  ;;  %v494_v19 = vmax.f32 %v489_v11, 0.0 }
 0x2dd   :  { %v496_v16 = vmul.f32 1.442695, %v495_v14 }
 0x2df   :  { %738 = vpow2.f32 %v496_v16 }
 0x2e9   :  { %v739_v17 = vpop.eup %738 }
 0x2ea   :  { %v607_v18 = vadd.f32 -1.0, %v739_v17 }
 0x2ec   :  { %v499_v1 = vmul.f32 0.1, %v607_v18 }
 0x2ee   :  { %v500_v20 = vmin.f32 %v499_v1, 0.0 }
 0x2f0   :  { %v501_v21 = vadd.f32 %v500_v20, %v494_v19 }
 0x2f2   :  { %v502_v22 = vpack.c.bf16 %v501_v21, %v501_v21 }
 0x2f4   :  { %695 = vmatmul.mubr.msk.bf16.vlgmr.msra.gmra.mrb[8].mxu1 %vm518_vm3, %v502_v22 }
 0x3c7   :  { %v556_v24 = vpop.f32.mrb[8].mxu1 }
 0x3c8   :  { %v557_v25 = vadd.f32 %v608_v23, %v556_v24  ;;  %v696_v26 = vpop.f32.mrb[9].mxu1 }
 0x3c9   :  { %v559_v27 = vpop.f32.mrb[10].mxu1 }
 0x3ca   :  { %562 = vst [vmem:[%s938_s9] sm:$0xff] %v557_v25  ;;  %v697_v28 = vpop.f32.mrb[11].mxu1 }

</bundles_post_ra>
